<compile_context>
chip_gen: v6e
topology: v6e:2x2x1
jax: 0.10.0
libtpu: 0.0.40
codegen_flags: <defaults>
</compile_context>

<pallas_src>
import math

import jax
import jax.numpy as jnp
import numpy as np
from jax.experimental import pallas as pl
from jax.experimental.pallas import tpu as pltpu


# ----------------------------------------------------------------------------
# Fused forward kernel (runs once per batch element; everything stays in VMEM)
# ----------------------------------------------------------------------------
def _sel(l_out, l_in, scale, offset, dtype):
    """0/1 matrix S with S[o, scale*o + offset] = 1 (out-of-range -> zero row)."""
    rows = jax.lax.broadcasted_iota(jnp.int32, (l_out, l_in), 0)
    cols = jax.lax.broadcasted_iota(jnp.int32, (l_out, l_in), 1)
    return (cols == scale * rows + offset).astype(dtype)


def _fused_ae_kernel(x_ref,
                     e1w_ref, e1b_ref, e2w_ref, e2b_ref, e3w_ref, e3b_ref,
                     d1w_ref, d1b_ref, d2w_ref, d2b_ref, d3w_ref, d3b_ref,
                     enc_ref, dec_ref):
    f32 = jnp.float32

    def conv_down(x, wmat, b):
        """Conv1d(k=3, stride=2, pad=1) + ReLU on (L, Cin) activations.

        wmat: (3*Cin, Cout) with rows ordered [W_k0; W_k1; W_k2],
        W_k[ci, co] = torch_weight[co, ci, k].  slab_k[o] = x[2o + k - 1].
        """
        l_in, c_in = x.shape
        l_out = l_in // 2
        y = b                                            # (1, Cout), broadcasts
        for k in range(3):
            sel_k = _sel(l_out, l_in, 2, k - 1, f32)     # row o -> input row 2o+k-1
            if c_in == 1:
                # First layer: broadcast-FMA form keeps the matmul well shaped
                # (no K=1 / K=3 contraction on the MXU).
                y = y + jnp.dot(sel_k, x * wmat[k:k + 1, :],
                                preferred_element_type=f32)
            else:
                w_k = wmat[k * c_in:(k + 1) * c_in, :]
                y = y + jnp.dot(
                    jnp.dot(sel_k, x, preferred_element_type=f32),
                    w_k, preferred_element_type=f32)
        return jnp.maximum(y, 0.0)

    def conv_up(x, wmat, b):
        """ConvTranspose1d(k=3, stride=2, pad=1, out_pad=1) + ReLU, polyphase.

        wmat: (3*Cin, Cout) with rows [W1; W0; W2] where Wk = torch_w[:, :, k].
        out[2m]   = x[m]   @ W1 + b
        out[2m+1] = x[m+1] @ W0 + x[m] @ W2 + b   (x[L] treated as 0)
        """
        l_in, c_in = x.shape
        l_out = 2 * l_in
        w1 = wmat[:c_in, :]
        w0 = wmat[c_in:2 * c_in, :]
        w2 = wmat[2 * c_in:, :]
        # x_next[m] = x[m + 1]  (zero row at m = L-1)
        x_next = jnp.dot(_sel(l_in, l_in, 1, 1, f32), x,
                         preferred_element_type=f32)
        y_even = jnp.maximum(
            jnp.dot(x, w1, preferred_element_type=f32) + b, 0.0)
        y_odd = jnp.maximum(
            jnp.dot(x_next, w0, preferred_element_type=f32)
            + jnp.dot(x, w2, preferred_element_type=f32) + b, 0.0)
        # Riffle rows: out[2m] = y_even[m], out[2m+1] = y_odd[m].
        stacked = jnp.concatenate([y_even, y_odd], axis=0)   # (2L, Cout)
        rows = jax.lax.broadcasted_iota(jnp.int32, (l_out, l_out), 0)
        cols = jax.lax.broadcasted_iota(jnp.int32, (l_out, l_out), 1)
        riffle = ((rows == 2 * cols).astype(f32)
                  + (rows == 2 * cols - (l_out - 1)).astype(f32))
        return jnp.dot(riffle, stacked, preferred_element_type=f32)

    x = x_ref[...]                                       # (L, 1)
    h = conv_down(x, e1w_ref[...], e1b_ref[...])         # (L/2, 32)
    h = conv_down(h, e2w_ref[...], e2b_ref[...])         # (L/4, 64)
    enc = conv_down(h, e3w_ref[...], e3b_ref[...])       # (L/8, 128) lane-dense
    enc_ref[...] = enc

    d = conv_up(enc, d1w_ref[...], d1b_ref[...])         # (L/4, 64)
    d = conv_up(d, d2w_ref[...], d2b_ref[...])           # (L/2, 32)
    dec = conv_up(d, d3w_ref[...], d3b_ref[...])         # (L, 1)
    dec_ref[...] = dec


# ----------------------------------------------------------------------------
# Wrapper: weight repacking (done once in plain JAX) + single pallas_call
# ----------------------------------------------------------------------------
def _conv_w_to_mat(w):
    # PyTorch Conv1d weight (Cout, Cin, K) -> (K*Cin, Cout), k-major rows.
    c_out, c_in, k = w.shape
    return jnp.transpose(w, (2, 1, 0)).reshape(k * c_in, c_out)


def _convT_w_to_mat(w):
    # PyTorch ConvTranspose1d weight (Cin, Cout, K) -> rows [W1; W0; W2].
    return jnp.concatenate([w[:, :, 1], w[:, :, 0], w[:, :, 2]], axis=0)


@jax.jit
def autoencoder_forward(params, x):
    """x: (B, 1, L) NCL -> (encoded (B, 128, L/8), decoded (B, 1, L))."""
    b_sz, c_in, seq = x.shape
    assert c_in == 1 and seq % 8 == 0
    x_nlc = jnp.transpose(x, (0, 2, 1)).astype(jnp.float32)     # (B, L, 1)

    e1w, e1b = params["enc1"]
    e2w, e2b = params["enc2"]
    e3w, e3b = params["enc3"]
    d1w, d1b = params["dec1"]
    d2w, d2b = params["dec2"]
    d3w, d3b = params["dec3"]

    operands = [
        x_nlc,
        _conv_w_to_mat(e1w), e1b.reshape(1, -1),
        _conv_w_to_mat(e2w), e2b.reshape(1, -1),
        _conv_w_to_mat(e3w), e3b.reshape(1, -1),
        _convT_w_to_mat(d1w), d1b.reshape(1, -1),
        _convT_w_to_mat(d2w), d2b.reshape(1, -1),
        _convT_w_to_mat(d3w), d3b.reshape(1, -1),
    ]

    def full_spec(a):
        nd = a.ndim
        return pl.BlockSpec(a.shape, lambda bb: (0,) * nd)

    in_specs = [pl.BlockSpec((None, seq, 1), lambda bb: (bb, 0, 0))]
    in_specs += [full_spec(op) for op in operands[1:]]

    out_shape = (
        jax.ShapeDtypeStruct((b_sz, seq // 8, 128), jnp.float32),
        jax.ShapeDtypeStruct((b_sz, seq, 1), jnp.float32),
    )
    out_specs = (
        pl.BlockSpec((None, seq // 8, 128), lambda bb: (bb, 0, 0)),
        pl.BlockSpec((None, seq, 1), lambda bb: (bb, 0, 0)),
    )

    encoded_nlc, decoded_nlc = pl.pallas_call(
        _fused_ae_kernel,
        out_shape=out_shape,
        grid=(b_sz,),
        in_specs=in_specs,
        out_specs=out_specs,
        compiler_params=pltpu.CompilerParams(
            dimension_semantics=("parallel",)),
    )(*operands)

    encoded = jnp.transpose(encoded_nlc, (0, 2, 1))      # (B, 128, L/8)  NCL
    decoded = jnp.transpose(decoded_nlc, (0, 2, 1))      # (B, 1, L)      NCL
    return encoded, decoded


# ----------------------------------------------------------------------------
# Parameter init (deterministic, PyTorch default: U(-1/sqrt(fan_in), +))
# ----------------------------------------------------------------------------
def _init_conv(key, c_out, c_in, k):
    kw, kb = jax.random.split(key)
    bound = 1.0 / math.sqrt(c_in * k)
    w = jax.random.uniform(kw, (c_out, c_in, k), jnp.float32, -bound, bound)
    b = jax.random.uniform(kb, (c_out,), jnp.float32, -bound, bound)
    return w, b


def _init_convT(key, c_in, c_out, k):
    kw, kb = jax.random.split(key)
    bound = 1.0 / math.sqrt(c_in * k)
    w = jax.random.uniform(kw, (c_in, c_out, k), jnp.float32, -bound, bound)
    b = jax.random.uniform(kb, (c_out,), jnp.float32, -bound, bound)
    return w, b


def make_params(key):
    keys = jax.random.split(key, 6)
    return {
        "enc1": _init_conv(keys[0], 32, 1, 3),
        "enc2": _init_conv(keys[1], 64, 32, 3),
        "enc3": _init_conv(keys[2], 128, 64, 3),
        "dec1": _init_convT(keys[3], 128, 64, 3),
        "dec2": _init_convT(keys[4], 64, 32, 3),
        "dec3": _init_convT(keys[5], 32, 1, 3),
    }


# ----------------------------------------------------------------------------
# Pure-XLA reference (for a numerical sanity check of the fused kernel)
# ----------------------------------------------------------------------------
def _ref_forward(params, x):
    def conv(x, w, b):
        y = jax.lax.conv_general_dilated(
            x, w, window_strides=(2,), padding=[(1, 1)],
            dimension_numbers=("NCH", "OIH", "NCH"),
            precision=jax.lax.Precision.HIGHEST)
        return jax.nn.relu(y + b[None, :, None])

    def convT(x, w, b):
        w_conv = jnp.flip(jnp.transpose(w, (1, 0, 2)), axis=2)
        y = jax.lax.conv_general_dilated(
            x, w_conv, window_strides=(1,), padding=[(1, 2)],
            lhs_dilation=(2,),
            dimension_numbers=("NCH", "OIH", "NCH"),
            precision=jax.lax.Precision.HIGHEST)
        return jax.nn.relu(y + b[None, :, None])

    h = conv(x, *params["enc1"])
    h = conv(h, *params["enc2"])
    enc = conv(h, *params["enc3"])
    d = convT(enc, *params["dec1"])
    d = convT(d, *params["dec2"])
    dec = convT(d, *params["dec3"])
    return enc, dec


if __name__ == "__main__":
    key = jax.random.PRNGKey(0)
    kx, kp = jax.random.split(key)

    B, C, L = 2, 1, 64
    x = jax.random.normal(kx, (B, C, L), jnp.float32)
    params = make_params(kp)

    encoded, decoded = autoencoder_forward(params, x)
    jax.block_until_ready((encoded, decoded))

    assert encoded.shape == (B, 128, L // 8), encoded.shape
    assert decoded.shape == (B, 1, L), decoded.shape

    enc_ref, dec_ref = _ref_forward(params, x)
    np.testing.assert_allclose(np.asarray(encoded), np.asarray(enc_ref),
                               rtol=2e-2, atol=2e-2)
    np.testing.assert_allclose(np.asarray(decoded), np.asarray(dec_ref),
                               rtol=2e-2, atol=2e-2)

    print("KERNEL_OK")
</pallas_src>

<mosaic_0001>
module attributes {stable_mosaic.version = 11 : i64} {
  func.func @_fused_ae_kernel(%arg0: i32, %arg1: memref<1x64x1xf32, #tpu.memory_space<vmem>>, %arg2: memref<3x32xf32, #tpu.memory_space<vmem>>, %arg3: memref<1x32xf32, #tpu.memory_space<vmem>>, %arg4: memref<96x64xf32, #tpu.memory_space<vmem>>, %arg5: memref<1x64xf32, #tpu.memory_space<vmem>>, %arg6: memref<192x128xf32, #tpu.memory_space<vmem>>, %arg7: memref<1x128xf32, #tpu.memory_space<vmem>>, %arg8: memref<384x64xf32, #tpu.memory_space<vmem>>, %arg9: memref<1x64xf32, #tpu.memory_space<vmem>>, %arg10: memref<192x32xf32, #tpu.memory_space<vmem>>, %arg11: memref<1x32xf32, #tpu.memory_space<vmem>>, %arg12: memref<96x1xf32, #tpu.memory_space<vmem>>, %arg13: memref<1x1xf32, #tpu.memory_space<vmem>>, %arg14: memref<1x8x128xf32, #tpu.memory_space<vmem>>, %arg15: memref<1x64x1xf32, #tpu.memory_space<vmem>>) attributes {dimension_semantics = [#tpu.dimension_semantics<parallel>], iteration_bounds = array<i64: 2>, scalar_prefetch = 0 : i64, scratch_operands = 0 : i64, tpu.core_type = #tpu.core_type<tc>, window_params = [{transform_indices = @transform_0, window_bounds = array<i64: 1, 64, 1>}, {pipeline_mode = #tpu.pipeline_mode<synchronous>, transform_indices = @transform_1, window_bounds = array<i64: 3, 32>}, {pipeline_mode = #tpu.pipeline_mode<synchronous>, transform_indices = @transform_2, window_bounds = array<i64: 1, 32>}, {pipeline_mode = #tpu.pipeline_mode<synchronous>, transform_indices = @transform_3, window_bounds = array<i64: 96, 64>}, {pipeline_mode = #tpu.pipeline_mode<synchronous>, transform_indices = @transform_4, window_bounds = array<i64: 1, 64>}, {pipeline_mode = #tpu.pipeline_mode<synchronous>, transform_indices = @transform_5, window_bounds = array<i64: 192, 128>}, {pipeline_mode = #tpu.pipeline_mode<synchronous>, transform_indices = @transform_6, window_bounds = array<i64: 1, 128>}, {pipeline_mode = #tpu.pipeline_mode<synchronous>, transform_indices = @transform_7, window_bounds = array<i64: 384, 64>}, {pipeline_mode = #tpu.pipeline_mode<synchronous>, transform_indices = @transform_8, window_bounds = array<i64: 1, 64>}, {pipeline_mode = #tpu.pipeline_mode<synchronous>, transform_indices = @transform_9, window_bounds = array<i64: 192, 32>}, {pipeline_mode = #tpu.pipeline_mode<synchronous>, transform_indices = @transform_10, window_bounds = array<i64: 1, 32>}, {pipeline_mode = #tpu.pipeline_mode<synchronous>, transform_indices = @transform_11, window_bounds = array<i64: 96, 1>}, {pipeline_mode = #tpu.pipeline_mode<synchronous>, transform_indices = @transform_12, window_bounds = array<i64: 1, 1>}, {transform_indices = @transform_13, window_bounds = array<i64: 1, 8, 128>}, {transform_indices = @transform_14, window_bounds = array<i64: 1, 64, 1>}]} {
    %c0 = arith.constant 0 : index
    %c0_0 = arith.constant 0 : index
    %c0_1 = arith.constant 0 : index
    %0 = vector.load %arg1[%c0, %c0_0, %c0_1] : memref<1x64x1xf32, #tpu.memory_space<vmem>>, vector<1x64x1xf32>
    %1 = vector.shape_cast %0 : vector<1x64x1xf32> to vector<64x1xf32>
    %c0_2 = arith.constant 0 : index
    %c0_3 = arith.constant 0 : index
    %2 = vector.load %arg2[%c0_2, %c0_3] : memref<3x32xf32, #tpu.memory_space<vmem>>, vector<3x32xf32>
    %c0_4 = arith.constant 0 : index
    %c0_5 = arith.constant 0 : index
    %3 = vector.load %arg3[%c0_4, %c0_5] : memref<1x32xf32, #tpu.memory_space<vmem>>, vector<1x32xf32>
    %4 = tpu.iota {dimensions = array<i32: 0>} : vector<32x64xi32>
    %5 = tpu.iota {dimensions = array<i32: 1>} : vector<32x64xi32>
    %c2_i32 = arith.constant 2 : i32
    %6 = vector.broadcast %c2_i32 : i32 to vector<32x64xi32>
    %7 = arith.muli %6, %4 : vector<32x64xi32>
    %c-1_i32 = arith.constant -1 : i32
    %8 = vector.broadcast %c-1_i32 : i32 to vector<32x64xi32>
    %9 = arith.addi %7, %8 : vector<32x64xi32>
    %10 = arith.cmpi eq, %5, %9 : vector<32x64xi32>
    %11 = arith.extui %10 : vector<32x64xi1> to vector<32x64xi32>
    %12 = arith.sitofp %11 : vector<32x64xi32> to vector<32x64xf32>
    %13 = vector.extract_strided_slice %2 {offsets = [0, 0], sizes = [1, 32], strides = [1, 1]} : vector<3x32xf32> to vector<1x32xf32>
    %14 = vector.broadcast %1 : vector<64x1xf32> to vector<64x32xf32>
    %15 = vector.broadcast %13 : vector<1x32xf32> to vector<64x32xf32>
    %16 = arith.mulf %14, %15 : vector<64x32xf32>
    %cst = arith.constant dense<0.000000e+00> : vector<32x32xf32>
    %17 = tpu.matmul %12, %16, %cst {dimension_numbers = #tpu.dot_dimension_numbers<[1], [0], [0], [1], [0, 0, 1, 1], [], []>} : vector<32x64xf32>, vector<64x32xf32>, vector<32x32xf32> -> vector<32x32xf32>
    %18 = vector.broadcast %3 : vector<1x32xf32> to vector<32x32xf32>
    %19 = arith.addf %18, %17 : vector<32x32xf32>
    %20 = tpu.iota {dimensions = array<i32: 0>} : vector<32x64xi32>
    %21 = tpu.iota {dimensions = array<i32: 1>} : vector<32x64xi32>
    %c2_i32_6 = arith.constant 2 : i32
    %22 = vector.broadcast %c2_i32_6 : i32 to vector<32x64xi32>
    %23 = arith.muli %22, %20 : vector<32x64xi32>
    %c0_i32 = arith.constant 0 : i32
    %24 = vector.broadcast %c0_i32 : i32 to vector<32x64xi32>
    %25 = arith.addi %23, %24 : vector<32x64xi32>
    %26 = arith.cmpi eq, %21, %25 : vector<32x64xi32>
    %27 = arith.extui %26 : vector<32x64xi1> to vector<32x64xi32>
    %28 = arith.sitofp %27 : vector<32x64xi32> to vector<32x64xf32>
    %29 = vector.extract_strided_slice %2 {offsets = [1, 0], sizes = [1, 32], strides = [1, 1]} : vector<3x32xf32> to vector<1x32xf32>
    %30 = vector.broadcast %1 : vector<64x1xf32> to vector<64x32xf32>
    %31 = vector.broadcast %29 : vector<1x32xf32> to vector<64x32xf32>
    %32 = arith.mulf %30, %31 : vector<64x32xf32>
    %cst_7 = arith.constant dense<0.000000e+00> : vector<32x32xf32>
    %33 = tpu.matmul %28, %32, %cst_7 {dimension_numbers = #tpu.dot_dimension_numbers<[1], [0], [0], [1], [0, 0, 1, 1], [], []>} : vector<32x64xf32>, vector<64x32xf32>, vector<32x32xf32> -> vector<32x32xf32>
    %34 = arith.addf %19, %33 : vector<32x32xf32>
    %35 = tpu.iota {dimensions = array<i32: 0>} : vector<32x64xi32>
    %36 = tpu.iota {dimensions = array<i32: 1>} : vector<32x64xi32>
    %c2_i32_8 = arith.constant 2 : i32
    %37 = vector.broadcast %c2_i32_8 : i32 to vector<32x64xi32>
    %38 = arith.muli %37, %35 : vector<32x64xi32>
    %c1_i32 = arith.constant 1 : i32
    %39 = vector.broadcast %c1_i32 : i32 to vector<32x64xi32>
    %40 = arith.addi %38, %39 : vector<32x64xi32>
    %41 = arith.cmpi eq, %36, %40 : vector<32x64xi32>
    %42 = arith.extui %41 : vector<32x64xi1> to vector<32x64xi32>
    %43 = arith.sitofp %42 : vector<32x64xi32> to vector<32x64xf32>
    %44 = vector.extract_strided_slice %2 {offsets = [2, 0], sizes = [1, 32], strides = [1, 1]} : vector<3x32xf32> to vector<1x32xf32>
    %45 = vector.broadcast %1 : vector<64x1xf32> to vector<64x32xf32>
    %46 = vector.broadcast %44 : vector<1x32xf32> to vector<64x32xf32>
    %47 = arith.mulf %45, %46 : vector<64x32xf32>
    %cst_9 = arith.constant dense<0.000000e+00> : vector<32x32xf32>
    %48 = tpu.matmul %43, %47, %cst_9 {dimension_numbers = #tpu.dot_dimension_numbers<[1], [0], [0], [1], [0, 0, 1, 1], [], []>} : vector<32x64xf32>, vector<64x32xf32>, vector<32x32xf32> -> vector<32x32xf32>
    %49 = arith.addf %34, %48 : vector<32x32xf32>
    %cst_10 = arith.constant 0.000000e+00 : f32
    %50 = vector.broadcast %cst_10 : f32 to vector<32x32xf32>
    %51 = arith.maximumf %49, %50 : vector<32x32xf32>
    %c0_11 = arith.constant 0 : index
    %c0_12 = arith.constant 0 : index
    %52 = vector.load %arg4[%c0_11, %c0_12] : memref<96x64xf32, #tpu.memory_space<vmem>>, vector<96x64xf32>
    %c0_13 = arith.constant 0 : index
    %c0_14 = arith.constant 0 : index
    %53 = vector.load %arg5[%c0_13, %c0_14] : memref<1x64xf32, #tpu.memory_space<vmem>>, vector<1x64xf32>
    %54 = tpu.iota {dimensions = array<i32: 0>} : vector<16x32xi32>
    %55 = tpu.iota {dimensions = array<i32: 1>} : vector<16x32xi32>
    %c2_i32_15 = arith.constant 2 : i32
    %56 = vector.broadcast %c2_i32_15 : i32 to vector<16x32xi32>
    %57 = arith.muli %56, %54 : vector<16x32xi32>
    %c-1_i32_16 = arith.constant -1 : i32
    %58 = vector.broadcast %c-1_i32_16 : i32 to vector<16x32xi32>
    %59 = arith.addi %57, %58 : vector<16x32xi32>
    %60 = arith.cmpi eq, %55, %59 : vector<16x32xi32>
    %61 = arith.extui %60 : vector<16x32xi1> to vector<16x32xi32>
    %62 = arith.sitofp %61 : vector<16x32xi32> to vector<16x32xf32>
    %63 = vector.extract_strided_slice %52 {offsets = [0, 0], sizes = [32, 64], strides = [1, 1]} : vector<96x64xf32> to vector<32x64xf32>
    %cst_17 = arith.constant dense<0.000000e+00> : vector<16x32xf32>
    %64 = tpu.matmul %62, %51, %cst_17 {dimension_numbers = #tpu.dot_dimension_numbers<[1], [0], [0], [1], [0, 0, 1, 1], [], []>} : vector<16x32xf32>, vector<32x32xf32>, vector<16x32xf32> -> vector<16x32xf32>
    %cst_18 = arith.constant dense<0.000000e+00> : vector<16x64xf32>
    %65 = tpu.matmul %64, %63, %cst_18 {dimension_numbers = #tpu.dot_dimension_numbers<[1], [0], [0], [1], [0, 0, 1, 1], [], []>} : vector<16x32xf32>, vector<32x64xf32>, vector<16x64xf32> -> vector<16x64xf32>
    %66 = vector.broadcast %53 : vector<1x64xf32> to vector<16x64xf32>
    %67 = arith.addf %66, %65 : vector<16x64xf32>
    %68 = tpu.iota {dimensions = array<i32: 0>} : vector<16x32xi32>
    %69 = tpu.iota {dimensions = array<i32: 1>} : vector<16x32xi32>
    %c2_i32_19 = arith.constant 2 : i32
    %70 = vector.broadcast %c2_i32_19 : i32 to vector<16x32xi32>
    %71 = arith.muli %70, %68 : vector<16x32xi32>
    %c0_i32_20 = arith.constant 0 : i32
    %72 = vector.broadcast %c0_i32_20 : i32 to vector<16x32xi32>
    %73 = arith.addi %71, %72 : vector<16x32xi32>
    %74 = arith.cmpi eq, %69, %73 : vector<16x32xi32>
    %75 = arith.extui %74 : vector<16x32xi1> to vector<16x32xi32>
    %76 = arith.sitofp %75 : vector<16x32xi32> to vector<16x32xf32>
    %77 = vector.extract_strided_slice %52 {offsets = [32, 0], sizes = [32, 64], strides = [1, 1]} : vector<96x64xf32> to vector<32x64xf32>
    %cst_21 = arith.constant dense<0.000000e+00> : vector<16x32xf32>
    %78 = tpu.matmul %76, %51, %cst_21 {dimension_numbers = #tpu.dot_dimension_numbers<[1], [0], [0], [1], [0, 0, 1, 1], [], []>} : vector<16x32xf32>, vector<32x32xf32>, vector<16x32xf32> -> vector<16x32xf32>
    %cst_22 = arith.constant dense<0.000000e+00> : vector<16x64xf32>
    %79 = tpu.matmul %78, %77, %cst_22 {dimension_numbers = #tpu.dot_dimension_numbers<[1], [0], [0], [1], [0, 0, 1, 1], [], []>} : vector<16x32xf32>, vector<32x64xf32>, vector<16x64xf32> -> vector<16x64xf32>
    %80 = arith.addf %67, %79 : vector<16x64xf32>
    %81 = tpu.iota {dimensions = array<i32: 0>} : vector<16x32xi32>
    %82 = tpu.iota {dimensions = array<i32: 1>} : vector<16x32xi32>
    %c2_i32_23 = arith.constant 2 : i32
    %83 = vector.broadcast %c2_i32_23 : i32 to vector<16x32xi32>
    %84 = arith.muli %83, %81 : vector<16x32xi32>
    %c1_i32_24 = arith.constant 1 : i32
    %85 = vector.broadcast %c1_i32_24 : i32 to vector<16x32xi32>
    %86 = arith.addi %84, %85 : vector<16x32xi32>
    %87 = arith.cmpi eq, %82, %86 : vector<16x32xi32>
    %88 = arith.extui %87 : vector<16x32xi1> to vector<16x32xi32>
    %89 = arith.sitofp %88 : vector<16x32xi32> to vector<16x32xf32>
    %90 = vector.extract_strided_slice %52 {offsets = [64, 0], sizes = [32, 64], strides = [1, 1]} : vector<96x64xf32> to vector<32x64xf32>
    %cst_25 = arith.constant dense<0.000000e+00> : vector<16x32xf32>
    %91 = tpu.matmul %89, %51, %cst_25 {dimension_numbers = #tpu.dot_dimension_numbers<[1], [0], [0], [1], [0, 0, 1, 1], [], []>} : vector<16x32xf32>, vector<32x32xf32>, vector<16x32xf32> -> vector<16x32xf32>
    %cst_26 = arith.constant dense<0.000000e+00> : vector<16x64xf32>
    %92 = tpu.matmul %91, %90, %cst_26 {dimension_numbers = #tpu.dot_dimension_numbers<[1], [0], [0], [1], [0, 0, 1, 1], [], []>} : vector<16x32xf32>, vector<32x64xf32>, vector<16x64xf32> -> vector<16x64xf32>
    %93 = arith.addf %80, %92 : vector<16x64xf32>
    %cst_27 = arith.constant 0.000000e+00 : f32
    %94 = vector.broadcast %cst_27 : f32 to vector<16x64xf32>
    %95 = arith.maximumf %93, %94 : vector<16x64xf32>
    %c0_28 = arith.constant 0 : index
    %c0_29 = arith.constant 0 : index
    %96 = vector.load %arg6[%c0_28, %c0_29] : memref<192x128xf32, #tpu.memory_space<vmem>>, vector<192x128xf32>
    %c0_30 = arith.constant 0 : index
    %c0_31 = arith.constant 0 : index
    %97 = vector.load %arg7[%c0_30, %c0_31] : memref<1x128xf32, #tpu.memory_space<vmem>>, vector<1x128xf32>
    %98 = tpu.iota {dimensions = array<i32: 0>} : vector<8x16xi32>
    %99 = tpu.iota {dimensions = array<i32: 1>} : vector<8x16xi32>
    %c2_i32_32 = arith.constant 2 : i32
    %100 = vector.broadcast %c2_i32_32 : i32 to vector<8x16xi32>
    %101 = arith.muli %100, %98 : vector<8x16xi32>
    %c-1_i32_33 = arith.constant -1 : i32
    %102 = vector.broadcast %c-1_i32_33 : i32 to vector<8x16xi32>
    %103 = arith.addi %101, %102 : vector<8x16xi32>
    %104 = arith.cmpi eq, %99, %103 : vector<8x16xi32>
    %105 = arith.extui %104 : vector<8x16xi1> to vector<8x16xi32>
    %106 = arith.sitofp %105 : vector<8x16xi32> to vector<8x16xf32>
    %107 = vector.extract_strided_slice %96 {offsets = [0, 0], sizes = [64, 128], strides = [1, 1]} : vector<192x128xf32> to vector<64x128xf32>
    %cst_34 = arith.constant dense<0.000000e+00> : vector<8x64xf32>
    %108 = tpu.matmul %106, %95, %cst_34 {dimension_numbers = #tpu.dot_dimension_numbers<[1], [0], [0], [1], [0, 0, 1, 1], [], []>} : vector<8x16xf32>, vector<16x64xf32>, vector<8x64xf32> -> vector<8x64xf32>
    %cst_35 = arith.constant dense<0.000000e+00> : vector<8x128xf32>
    %109 = tpu.matmul %108, %107, %cst_35 {dimension_numbers = #tpu.dot_dimension_numbers<[1], [0], [0], [1], [0, 0, 1, 1], [], []>} : vector<8x64xf32>, vector<64x128xf32>, vector<8x128xf32> -> vector<8x128xf32>
    %110 = vector.broadcast %97 : vector<1x128xf32> to vector<8x128xf32>
    %111 = arith.addf %110, %109 : vector<8x128xf32>
    %112 = tpu.iota {dimensions = array<i32: 0>} : vector<8x16xi32>
    %113 = tpu.iota {dimensions = array<i32: 1>} : vector<8x16xi32>
    %c2_i32_36 = arith.constant 2 : i32
    %114 = vector.broadcast %c2_i32_36 : i32 to vector<8x16xi32>
    %115 = arith.muli %114, %112 : vector<8x16xi32>
    %c0_i32_37 = arith.constant 0 : i32
    %116 = vector.broadcast %c0_i32_37 : i32 to vector<8x16xi32>
    %117 = arith.addi %115, %116 : vector<8x16xi32>
    %118 = arith.cmpi eq, %113, %117 : vector<8x16xi32>
    %119 = arith.extui %118 : vector<8x16xi1> to vector<8x16xi32>
    %120 = arith.sitofp %119 : vector<8x16xi32> to vector<8x16xf32>
    %121 = vector.extract_strided_slice %96 {offsets = [64, 0], sizes = [64, 128], strides = [1, 1]} : vector<192x128xf32> to vector<64x128xf32>
    %cst_38 = arith.constant dense<0.000000e+00> : vector<8x64xf32>
    %122 = tpu.matmul %120, %95, %cst_38 {dimension_numbers = #tpu.dot_dimension_numbers<[1], [0], [0], [1], [0, 0, 1, 1], [], []>} : vector<8x16xf32>, vector<16x64xf32>, vector<8x64xf32> -> vector<8x64xf32>
    %cst_39 = arith.constant dense<0.000000e+00> : vector<8x128xf32>
    %123 = tpu.matmul %122, %121, %cst_39 {dimension_numbers = #tpu.dot_dimension_numbers<[1], [0], [0], [1], [0, 0, 1, 1], [], []>} : vector<8x64xf32>, vector<64x128xf32>, vector<8x128xf32> -> vector<8x128xf32>
    %124 = arith.addf %111, %123 : vector<8x128xf32>
    %125 = tpu.iota {dimensions = array<i32: 0>} : vector<8x16xi32>
    %126 = tpu.iota {dimensions = array<i32: 1>} : vector<8x16xi32>
    %c2_i32_40 = arith.constant 2 : i32
    %127 = vector.broadcast %c2_i32_40 : i32 to vector<8x16xi32>
    %128 = arith.muli %127, %125 : vector<8x16xi32>
    %c1_i32_41 = arith.constant 1 : i32
    %129 = vector.broadcast %c1_i32_41 : i32 to vector<8x16xi32>
    %130 = arith.addi %128, %129 : vector<8x16xi32>
    %131 = arith.cmpi eq, %126, %130 : vector<8x16xi32>
    %132 = arith.extui %131 : vector<8x16xi1> to vector<8x16xi32>
    %133 = arith.sitofp %132 : vector<8x16xi32> to vector<8x16xf32>
    %134 = vector.extract_strided_slice %96 {offsets = [128, 0], sizes = [64, 128], strides = [1, 1]} : vector<192x128xf32> to vector<64x128xf32>
    %cst_42 = arith.constant dense<0.000000e+00> : vector<8x64xf32>
    %135 = tpu.matmul %133, %95, %cst_42 {dimension_numbers = #tpu.dot_dimension_numbers<[1], [0], [0], [1], [0, 0, 1, 1], [], []>} : vector<8x16xf32>, vector<16x64xf32>, vector<8x64xf32> -> vector<8x64xf32>
    %cst_43 = arith.constant dense<0.000000e+00> : vector<8x128xf32>
    %136 = tpu.matmul %135, %134, %cst_43 {dimension_numbers = #tpu.dot_dimension_numbers<[1], [0], [0], [1], [0, 0, 1, 1], [], []>} : vector<8x64xf32>, vector<64x128xf32>, vector<8x128xf32> -> vector<8x128xf32>
    %137 = arith.addf %124, %136 : vector<8x128xf32>
    %cst_44 = arith.constant 0.000000e+00 : f32
    %138 = vector.broadcast %cst_44 : f32 to vector<8x128xf32>
    %139 = arith.maximumf %137, %138 : vector<8x128xf32>
    %c0_45 = arith.constant 0 : index
    %c0_46 = arith.constant 0 : index
    %c0_47 = arith.constant 0 : index
    %140 = vector.load %arg14[%c0_45, %c0_46, %c0_47] : memref<1x8x128xf32, #tpu.memory_space<vmem>>, vector<1x8x128xf32>
    %141 = vector.shape_cast %140 : vector<1x8x128xf32> to vector<8x128xf32>
    %142 = vector.shape_cast %139 : vector<8x128xf32> to vector<1x8x128xf32>
    tpu.vector_store %arg14[%c0_45, %c0_46, %c0_47], %142 {strides = array<i32>} : memref<1x8x128xf32, #tpu.memory_space<vmem>>, vector<1x8x128xf32>,
    %c0_48 = arith.constant 0 : index
    %c0_49 = arith.constant 0 : index
    %143 = vector.load %arg8[%c0_48, %c0_49] : memref<384x64xf32, #tpu.memory_space<vmem>>, vector<384x64xf32>
    %c0_50 = arith.constant 0 : index
    %c0_51 = arith.constant 0 : index
    %144 = vector.load %arg9[%c0_50, %c0_51] : memref<1x64xf32, #tpu.memory_space<vmem>>, vector<1x64xf32>
    %145 = vector.extract_strided_slice %143 {offsets = [0, 0], sizes = [128, 64], strides = [1, 1]} : vector<384x64xf32> to vector<128x64xf32>
    %146 = vector.extract_strided_slice %143 {offsets = [128, 0], sizes = [128, 64], strides = [1, 1]} : vector<384x64xf32> to vector<128x64xf32>
    %147 = vector.extract_strided_slice %143 {offsets = [256, 0], sizes = [128, 64], strides = [1, 1]} : vector<384x64xf32> to vector<128x64xf32>
    %148 = tpu.iota {dimensions = array<i32: 0>} : vector<8x8xi32>
    %149 = tpu.iota {dimensions = array<i32: 1>} : vector<8x8xi32>
    %c1_i32_52 = arith.constant 1 : i32
    %150 = vector.broadcast %c1_i32_52 : i32 to vector<8x8xi32>
    %151 = arith.muli %150, %148 : vector<8x8xi32>
    %c1_i32_53 = arith.constant 1 : i32
    %152 = vector.broadcast %c1_i32_53 : i32 to vector<8x8xi32>
    %153 = arith.addi %151, %152 : vector<8x8xi32>
    %154 = arith.cmpi eq, %149, %153 : vector<8x8xi32>
    %155 = arith.extui %154 : vector<8x8xi1> to vector<8x8xi32>
    %156 = arith.sitofp %155 : vector<8x8xi32> to vector<8x8xf32>
    %cst_54 = arith.constant dense<0.000000e+00> : vector<8x128xf32>
    %157 = tpu.matmul %156, %139, %cst_54 {dimension_numbers = #tpu.dot_dimension_numbers<[1], [0], [0], [1], [0, 0, 1, 1], [], []>} : vector<8x8xf32>, vector<8x128xf32>, vector<8x128xf32> -> vector<8x128xf32>
    %cst_55 = arith.constant dense<0.000000e+00> : vector<8x64xf32>
    %158 = tpu.matmul %139, %145, %cst_55 {dimension_numbers = #tpu.dot_dimension_numbers<[1], [0], [0], [1], [0, 0, 1, 1], [], []>} : vector<8x128xf32>, vector<128x64xf32>, vector<8x64xf32> -> vector<8x64xf32>
    %159 = vector.broadcast %144 : vector<1x64xf32> to vector<8x64xf32>
    %160 = arith.addf %158, %159 : vector<8x64xf32>
    %cst_56 = arith.constant 0.000000e+00 : f32
    %161 = vector.broadcast %cst_56 : f32 to vector<8x64xf32>
    %162 = arith.maximumf %160, %161 : vector<8x64xf32>
    %cst_57 = arith.constant dense<0.000000e+00> : vector<8x64xf32>
    %163 = tpu.matmul %157, %146, %cst_57 {dimension_numbers = #tpu.dot_dimension_numbers<[1], [0], [0], [1], [0, 0, 1, 1], [], []>} : vector<8x128xf32>, vector<128x64xf32>, vector<8x64xf32> -> vector<8x64xf32>
    %cst_58 = arith.constant dense<0.000000e+00> : vector<8x64xf32>
    %164 = tpu.matmul %139, %147, %cst_58 {dimension_numbers = #tpu.dot_dimension_numbers<[1], [0], [0], [1], [0, 0, 1, 1], [], []>} : vector<8x128xf32>, vector<128x64xf32>, vector<8x64xf32> -> vector<8x64xf32>
    %165 = arith.addf %163, %164 : vector<8x64xf32>
    %166 = vector.broadcast %144 : vector<1x64xf32> to vector<8x64xf32>
    %167 = arith.addf %165, %166 : vector<8x64xf32>
    %cst_59 = arith.constant 0.000000e+00 : f32
    %168 = vector.broadcast %cst_59 : f32 to vector<8x64xf32>
    %169 = arith.maximumf %167, %168 : vector<8x64xf32>
    %170 = tpu.concatenate %162, %169 in 0 : vector<8x64xf32>, vector<8x64xf32> -> vector<16x64xf32>
    %171 = tpu.iota {dimensions = array<i32: 0>} : vector<16x16xi32>
    %172 = tpu.iota {dimensions = array<i32: 1>} : vector<16x16xi32>
    %c2_i32_60 = arith.constant 2 : i32
    %173 = vector.broadcast %c2_i32_60 : i32 to vector<16x16xi32>
    %174 = arith.muli %173, %172 : vector<16x16xi32>
    %175 = arith.cmpi eq, %171, %174 : vector<16x16xi32>
    %176 = arith.extui %175 : vector<16x16xi1> to vector<16x16xi32>
    %177 = arith.sitofp %176 : vector<16x16xi32> to vector<16x16xf32>
    %c2_i32_61 = arith.constant 2 : i32
    %178 = vector.broadcast %c2_i32_61 : i32 to vector<16x16xi32>
    %179 = arith.muli %178, %172 : vector<16x16xi32>
    %c15_i32 = arith.constant 15 : i32
    %180 = vector.broadcast %c15_i32 : i32 to vector<16x16xi32>
    %181 = arith.subi %179, %180 : vector<16x16xi32>
    %182 = arith.cmpi eq, %171, %181 : vector<16x16xi32>
    %183 = arith.extui %182 : vector<16x16xi1> to vector<16x16xi32>
    %184 = arith.sitofp %183 : vector<16x16xi32> to vector<16x16xf32>
    %185 = arith.addf %177, %184 : vector<16x16xf32>
    %cst_62 = arith.constant dense<0.000000e+00> : vector<16x64xf32>
    %186 = tpu.matmul %185, %170, %cst_62 {dimension_numbers = #tpu.dot_dimension_numbers<[1], [0], [0], [1], [0, 0, 1, 1], [], []>} : vector<16x16xf32>, vector<16x64xf32>, vector<16x64xf32> -> vector<16x64xf32>
    %c0_63 = arith.constant 0 : index
    %c0_64 = arith.constant 0 : index
    %187 = vector.load %arg10[%c0_63, %c0_64] : memref<192x32xf32, #tpu.memory_space<vmem>>, vector<192x32xf32>
    %c0_65 = arith.constant 0 : index
    %c0_66 = arith.constant 0 : index
    %188 = vector.load %arg11[%c0_65, %c0_66] : memref<1x32xf32, #tpu.memory_space<vmem>>, vector<1x32xf32>
    %189 = vector.extract_strided_slice %187 {offsets = [0, 0], sizes = [64, 32], strides = [1, 1]} : vector<192x32xf32> to vector<64x32xf32>
    %190 = vector.extract_strided_slice %187 {offsets = [64, 0], sizes = [64, 32], strides = [1, 1]} : vector<192x32xf32> to vector<64x32xf32>
    %191 = vector.extract_strided_slice %187 {offsets = [128, 0], sizes = [64, 32], strides = [1, 1]} : vector<192x32xf32> to vector<64x32xf32>
    %192 = tpu.iota {dimensions = array<i32: 0>} : vector<16x16xi32>
    %193 = tpu.iota {dimensions = array<i32: 1>} : vector<16x16xi32>
    %c1_i32_67 = arith.constant 1 : i32
    %194 = vector.broadcast %c1_i32_67 : i32 to vector<16x16xi32>
    %195 = arith.muli %194, %192 : vector<16x16xi32>
    %c1_i32_68 = arith.constant 1 : i32
    %196 = vector.broadcast %c1_i32_68 : i32 to vector<16x16xi32>
    %197 = arith.addi %195, %196 : vector<16x16xi32>
    %198 = arith.cmpi eq, %193, %197 : vector<16x16xi32>
    %199 = arith.extui %198 : vector<16x16xi1> to vector<16x16xi32>
    %200 = arith.sitofp %199 : vector<16x16xi32> to vector<16x16xf32>
    %cst_69 = arith.constant dense<0.000000e+00> : vector<16x64xf32>
    %201 = tpu.matmul %200, %186, %cst_69 {dimension_numbers = #tpu.dot_dimension_numbers<[1], [0], [0], [1], [0, 0, 1, 1], [], []>} : vector<16x16xf32>, vector<16x64xf32>, vector<16x64xf32> -> vector<16x64xf32>
    %cst_70 = arith.constant dense<0.000000e+00> : vector<16x32xf32>
    %202 = tpu.matmul %186, %189, %cst_70 {dimension_numbers = #tpu.dot_dimension_numbers<[1], [0], [0], [1], [0, 0, 1, 1], [], []>} : vector<16x64xf32>, vector<64x32xf32>, vector<16x32xf32> -> vector<16x32xf32>
    %203 = vector.broadcast %188 : vector<1x32xf32> to vector<16x32xf32>
    %204 = arith.addf %202, %203 : vector<16x32xf32>
    %cst_71 = arith.constant 0.000000e+00 : f32
    %205 = vector.broadcast %cst_71 : f32 to vector<16x32xf32>
    %206 = arith.maximumf %204, %205 : vector<16x32xf32>
    %cst_72 = arith.constant dense<0.000000e+00> : vector<16x32xf32>
    %207 = tpu.matmul %201, %190, %cst_72 {dimension_numbers = #tpu.dot_dimension_numbers<[1], [0], [0], [1], [0, 0, 1, 1], [], []>} : vector<16x64xf32>, vector<64x32xf32>, vector<16x32xf32> -> vector<16x32xf32>
    %cst_73 = arith.constant dense<0.000000e+00> : vector<16x32xf32>
    %208 = tpu.matmul %186, %191, %cst_73 {dimension_numbers = #tpu.dot_dimension_numbers<[1], [0], [0], [1], [0, 0, 1, 1], [], []>} : vector<16x64xf32>, vector<64x32xf32>, vector<16x32xf32> -> vector<16x32xf32>
    %209 = arith.addf %207, %208 : vector<16x32xf32>
    %210 = vector.broadcast %188 : vector<1x32xf32> to vector<16x32xf32>
    %211 = arith.addf %209, %210 : vector<16x32xf32>
    %cst_74 = arith.constant 0.000000e+00 : f32
    %212 = vector.broadcast %cst_74 : f32 to vector<16x32xf32>
    %213 = arith.maximumf %211, %212 : vector<16x32xf32>
    %214 = tpu.concatenate %206, %213 in 0 : vector<16x32xf32>, vector<16x32xf32> -> vector<32x32xf32>
    %215 = tpu.iota {dimensions = array<i32: 0>} : vector<32x32xi32>
    %216 = tpu.iota {dimensions = array<i32: 1>} : vector<32x32xi32>
    %c2_i32_75 = arith.constant 2 : i32
    %217 = vector.broadcast %c2_i32_75 : i32 to vector<32x32xi32>
    %218 = arith.muli %217, %216 : vector<32x32xi32>
    %219 = arith.cmpi eq, %215, %218 : vector<32x32xi32>
    %220 = arith.extui %219 : vector<32x32xi1> to vector<32x32xi32>
    %221 = arith.sitofp %220 : vector<32x32xi32> to vector<32x32xf32>
    %c2_i32_76 = arith.constant 2 : i32
    %222 = vector.broadcast %c2_i32_76 : i32 to vector<32x32xi32>
    %223 = arith.muli %222, %216 : vector<32x32xi32>
    %c31_i32 = arith.constant 31 : i32
    %224 = vector.broadcast %c31_i32 : i32 to vector<32x32xi32>
    %225 = arith.subi %223, %224 : vector<32x32xi32>
    %226 = arith.cmpi eq, %215, %225 : vector<32x32xi32>
    %227 = arith.extui %226 : vector<32x32xi1> to vector<32x32xi32>
    %228 = arith.sitofp %227 : vector<32x32xi32> to vector<32x32xf32>
    %229 = arith.addf %221, %228 : vector<32x32xf32>
    %cst_77 = arith.constant dense<0.000000e+00> : vector<32x32xf32>
    %230 = tpu.matmul %229, %214, %cst_77 {dimension_numbers = #tpu.dot_dimension_numbers<[1], [0], [0], [1], [0, 0, 1, 1], [], []>} : vector<32x32xf32>, vector<32x32xf32>, vector<32x32xf32> -> vector<32x32xf32>
    %c0_78 = arith.constant 0 : index
    %c0_79 = arith.constant 0 : index
    %231 = vector.load %arg12[%c0_78, %c0_79] : memref<96x1xf32, #tpu.memory_space<vmem>>, vector<96x1xf32>
    %c0_80 = arith.constant 0 : index
    %c0_81 = arith.constant 0 : index
    %232 = vector.load %arg13[%c0_80, %c0_81] : memref<1x1xf32, #tpu.memory_space<vmem>>, vector<1x1xf32>
    %233 = vector.extract_strided_slice %231 {offsets = [0, 0], sizes = [32, 1], strides = [1, 1]} : vector<96x1xf32> to vector<32x1xf32>
    %234 = vector.extract_strided_slice %231 {offsets = [32, 0], sizes = [32, 1], strides = [1, 1]} : vector<96x1xf32> to vector<32x1xf32>
    %235 = vector.extract_strided_slice %231 {offsets = [64, 0], sizes = [32, 1], strides = [1, 1]} : vector<96x1xf32> to vector<32x1xf32>
    %236 = tpu.iota {dimensions = array<i32: 0>} : vector<32x32xi32>
    %237 = tpu.iota {dimensions = array<i32: 1>} : vector<32x32xi32>
    %c1_i32_82 = arith.constant 1 : i32
    %238 = vector.broadcast %c1_i32_82 : i32 to vector<32x32xi32>
    %239 = arith.muli %238, %236 : vector<32x32xi32>
    %c1_i32_83 = arith.constant 1 : i32
    %240 = vector.broadcast %c1_i32_83 : i32 to vector<32x32xi32>
    %241 = arith.addi %239, %240 : vector<32x32xi32>
    %242 = arith.cmpi eq, %237, %241 : vector<32x32xi32>
    %243 = arith.extui %242 : vector<32x32xi1> to vector<32x32xi32>
    %244 = arith.sitofp %243 : vector<32x32xi32> to vector<32x32xf32>
    %cst_84 = arith.constant dense<0.000000e+00> : vector<32x32xf32>
    %245 = tpu.matmul %244, %230, %cst_84 {dimension_numbers = #tpu.dot_dimension_numbers<[1], [0], [0], [1], [0, 0, 1, 1], [], []>} : vector<32x32xf32>, vector<32x32xf32>, vector<32x32xf32> -> vector<32x32xf32>
    %cst_85 = arith.constant dense<0.000000e+00> : vector<32x1xf32>
    %246 = tpu.matmul %230, %233, %cst_85 {dimension_numbers = #tpu.dot_dimension_numbers<[1], [0], [0], [1], [0, 0, 1, 1], [], []>} : vector<32x32xf32>, vector<32x1xf32>, vector<32x1xf32> -> vector<32x1xf32>
    %247 = vector.broadcast %232 : vector<1x1xf32> to vector<32x1xf32>
    %248 = arith.addf %246, %247 : vector<32x1xf32>
    %cst_86 = arith.constant 0.000000e+00 : f32
    %249 = vector.broadcast %cst_86 : f32 to vector<32x1xf32>
    %250 = arith.maximumf %248, %249 : vector<32x1xf32>
    %cst_87 = arith.constant dense<0.000000e+00> : vector<32x1xf32>
    %251 = tpu.matmul %245, %234, %cst_87 {dimension_numbers = #tpu.dot_dimension_numbers<[1], [0], [0], [1], [0, 0, 1, 1], [], []>} : vector<32x32xf32>, vector<32x1xf32>, vector<32x1xf32> -> vector<32x1xf32>
    %cst_88 = arith.constant dense<0.000000e+00> : vector<32x1xf32>
    %252 = tpu.matmul %230, %235, %cst_88 {dimension_numbers = #tpu.dot_dimension_numbers<[1], [0], [0], [1], [0, 0, 1, 1], [], []>} : vector<32x32xf32>, vector<32x1xf32>, vector<32x1xf32> -> vector<32x1xf32>
    %253 = arith.addf %251, %252 : vector<32x1xf32>
    %254 = vector.broadcast %232 : vector<1x1xf32> to vector<32x1xf32>
    %255 = arith.addf %253, %254 : vector<32x1xf32>
    %cst_89 = arith.constant 0.000000e+00 : f32
    %256 = vector.broadcast %cst_89 : f32 to vector<32x1xf32>
    %257 = arith.maximumf %255, %256 : vector<32x1xf32>
    %258 = tpu.concatenate %250, %257 in 0 : vector<32x1xf32>, vector<32x1xf32> -> vector<64x1xf32>
    %259 = tpu.iota {dimensions = array<i32: 0>} : vector<64x64xi32>
    %260 = tpu.iota {dimensions = array<i32: 1>} : vector<64x64xi32>
    %c2_i32_90 = arith.constant 2 : i32
    %261 = vector.broadcast %c2_i32_90 : i32 to vector<64x64xi32>
    %262 = arith.muli %261, %260 : vector<64x64xi32>
    %263 = arith.cmpi eq, %259, %262 : vector<64x64xi32>
    %264 = arith.extui %263 : vector<64x64xi1> to vector<64x64xi32>
    %265 = arith.sitofp %264 : vector<64x64xi32> to vector<64x64xf32>
    %c2_i32_91 = arith.constant 2 : i32
    %266 = vector.broadcast %c2_i32_91 : i32 to vector<64x64xi32>
    %267 = arith.muli %266, %260 : vector<64x64xi32>
    %c63_i32 = arith.constant 63 : i32
    %268 = vector.broadcast %c63_i32 : i32 to vector<64x64xi32>
    %269 = arith.subi %267, %268 : vector<64x64xi32>
    %270 = arith.cmpi eq, %259, %269 : vector<64x64xi32>
    %271 = arith.extui %270 : vector<64x64xi1> to vector<64x64xi32>
    %272 = arith.sitofp %271 : vector<64x64xi32> to vector<64x64xf32>
    %273 = arith.addf %265, %272 : vector<64x64xf32>
    %cst_92 = arith.constant dense<0.000000e+00> : vector<64x1xf32>
    %274 = tpu.matmul %273, %258, %cst_92 {dimension_numbers = #tpu.dot_dimension_numbers<[1], [0], [0], [1], [0, 0, 1, 1], [], []>} : vector<64x64xf32>, vector<64x1xf32>, vector<64x1xf32> -> vector<64x1xf32>
    %c0_93 = arith.constant 0 : index
    %c0_94 = arith.constant 0 : index
    %c0_95 = arith.constant 0 : index
    %275 = vector.load %arg15[%c0_93, %c0_94, %c0_95] : memref<1x64x1xf32, #tpu.memory_space<vmem>>, vector<1x64x1xf32>
    %276 = vector.shape_cast %275 : vector<1x64x1xf32> to vector<64x1xf32>
    %277 = vector.shape_cast %274 : vector<64x1xf32> to vector<1x64x1xf32>
    tpu.vector_store %arg15[%c0_93, %c0_94, %c0_95], %277 {strides = array<i32>} : memref<1x64x1xf32, #tpu.memory_space<vmem>>, vector<1x64x1xf32>,
    return
  }
  func.func @transform_0(%arg0: i32) -> (i32, i32, i32) {
    %c0_i32 = arith.constant 0 : i32
    %c0_i32_0 = arith.constant 0 : i32
    %c0_i32_1 = arith.constant 0 : i32
    return %arg0, %c0_i32, %c0_i32_0 : i32, i32, i32
  }
  func.func @transform_1(%arg0: i32) -> (i32, i32) {
    %c0_i32 = arith.constant 0 : i32
    %c0_i32_0 = arith.constant 0 : i32
    %c0_i32_1 = arith.constant 0 : i32
    return %c0_i32, %c0_i32_0 : i32, i32
  }
  func.func @transform_2(%arg0: i32) -> (i32, i32) {
    %c0_i32 = arith.constant 0 : i32
    %c0_i32_0 = arith.constant 0 : i32
    %c0_i32_1 = arith.constant 0 : i32
    return %c0_i32, %c0_i32_0 : i32, i32
  }
  func.func @transform_3(%arg0: i32) -> (i32, i32) {
    %c0_i32 = arith.constant 0 : i32
    %c0_i32_0 = arith.constant 0 : i32
    %c0_i32_1 = arith.constant 0 : i32
    return %c0_i32, %c0_i32_0 : i32, i32
  }
  func.func @transform_4(%arg0: i32) -> (i32, i32) {
    %c0_i32 = arith.constant 0 : i32
    %c0_i32_0 = arith.constant 0 : i32
    %c0_i32_1 = arith.constant 0 : i32
    return %c0_i32, %c0_i32_0 : i32, i32
  }
  func.func @transform_5(%arg0: i32) -> (i32, i32) {
    %c0_i32 = arith.constant 0 : i32
    %c0_i32_0 = arith.constant 0 : i32
    %c0_i32_1 = arith.constant 0 : i32
    return %c0_i32, %c0_i32_0 : i32, i32
  }
  func.func @transform_6(%arg0: i32) -> (i32, i32) {
    %c0_i32 = arith.constant 0 : i32
    %c0_i32_0 = arith.constant 0 : i32
    %c0_i32_1 = arith.constant 0 : i32
    return %c0_i32, %c0_i32_0 : i32, i32
  }
  func.func @transform_7(%arg0: i32) -> (i32, i32) {
    %c0_i32 = arith.constant 0 : i32
    %c0_i32_0 = arith.constant 0 : i32
    %c0_i32_1 = arith.constant 0 : i32
    return %c0_i32, %c0_i32_0 : i32, i32
  }
  func.func @transform_8(%arg0: i32) -> (i32, i32) {
    %c0_i32 = arith.constant 0 : i32
    %c0_i32_0 = arith.constant 0 : i32
    %c0_i32_1 = arith.constant 0 : i32
    return %c0_i32, %c0_i32_0 : i32, i32
  }
  func.func @transform_9(%arg0: i32) -> (i32, i32) {
    %c0_i32 = arith.constant 0 : i32
    %c0_i32_0 = arith.constant 0 : i32
    %c0_i32_1 = arith.constant 0 : i32
    return %c0_i32, %c0_i32_0 : i32, i32
  }
  func.func @transform_10(%arg0: i32) -> (i32, i32) {
    %c0_i32 = arith.constant 0 : i32
    %c0_i32_0 = arith.constant 0 : i32
    %c0_i32_1 = arith.constant 0 : i32
    return %c0_i32, %c0_i32_0 : i32, i32
  }
  func.func @transform_11(%arg0: i32) -> (i32, i32) {
    %c0_i32 = arith.constant 0 : i32
    %c0_i32_0 = arith.constant 0 : i32
    %c0_i32_1 = arith.constant 0 : i32
    return %c0_i32, %c0_i32_0 : i32, i32
  }
  func.func @transform_12(%arg0: i32) -> (i32, i32) {
    %c0_i32 = arith.constant 0 : i32
    %c0_i32_0 = arith.constant 0 : i32
    %c0_i32_1 = arith.constant 0 : i32
    return %c0_i32, %c0_i32_0 : i32, i32
  }
  func.func @transform_13(%arg0: i32) -> (i32, i32, i32) {
    %c0_i32 = arith.constant 0 : i32
    %c0_i32_0 = arith.constant 0 : i32
    %c0_i32_1 = arith.constant 0 : i32
    return %arg0, %c0_i32, %c0_i32_0 : i32, i32, i32
  }
  func.func @transform_14(%arg0: i32) -> (i32, i32, i32) {
    %c0_i32 = arith.constant 0 : i32
    %c0_i32_0 = arith.constant 0 : i32
    %c0_i32_1 = arith.constant 0 : i32
    return %arg0, %c0_i32, %c0_i32_0 : i32, i32, i32
  }
}

</mosaic_0001>

<bundles_post_ra>
// kernel: autoencoder_forward.1
= control target key start
LH: loop header
LB: loop body
LE: loop exit
PB: predicated region body
PF: predicated region fallthrough
CT: control target
= control target key end

     0   :  { %s5511_s0 = inlined_call_operand.vmem [shape: f32[2,64,1], index: 0, kind: input, shape index: {}]   ;;  %s5512_s1 = inlined_call_operand.vmem [shape: f32[3,32], index: 1, kind: input, shape index: {}]   ;;  %s5513_s2 = inlined_call_operand.vmem [shape: f32[1,32], index: 2, kind: input, shape index: {}]   ;;  %s5514_s3 = inlined_call_operand.vmem [shape: f32[96,64], index: 3, kind: input, shape index: {}]   ;;  %s5515_s4 = inlined_call_operand.vmem [shape: f32[1,64], index: 4, kind: input, shape index: {}]   ;;  %s5516_s5 = inlined_call_operand.vmem [shape: f32[192,128], index: 5, kind: input, shape index: {}]   ;;  %s5517_s6 = inlined_call_operand.vmem [shape: f32[1,128], index: 6, kind: input, shape index: {}]   ;;  %s5518_s7 = inlined_call_operand.vmem [shape: f32[384,64], index: 7, kind: input, shape index: {}]   ;;  %s5519_s8 = inlined_call_operand.vmem [shape: f32[1,64], index: 8, kind: input, shape index: {}]   ;;  %s5520_s9 = inlined_call_operand.vmem [shape: f32[192,32], index: 9, kind: input, shape index: {}]   ;;  %s5521_s10 = inlined_call_operand.vmem [shape: f32[1,32], index: 10, kind: input, shape index: {}]   ;;  %s5522_s11 = inlined_call_operand.vmem [shape: f32[96,1], index: 11, kind: input, shape index: {}]   ;;  %s5523_s12 = inlined_call_operand.<no memory space> [shape: f32[1,1], index: 12, kind: input, shape index: {}]   ;;  %s5524_s13 = inlined_call_operand.hbm [shape: f32[2,8,128], index: 13, kind: output, shape index: {0}]   ;;  %s5525_s14 = inlined_call_operand.vmem [shape: f32[2,64,1], index: 14, kind: output, shape index: {1}]  }
   0x1   :  { %5529 = sst [smem:[#allocation6_spill]] %s5511_s0  ;;  %v20_v0 = vstv %s5523_s12 }
   0x2   :  { %5530 = sst [smem:[#allocation7_spill]] %s5512_s1  ;;  %21 = vst [vmem:[#allocation2] sm:$0x1] %v20_v0 }
   0x3   :  { %5531 = sst [smem:[#allocation8_spill]] %s5513_s2 }
   0x4   :  { %5532 = sst [smem:[#allocation9_spill]] %s5514_s3 }
   0x5   :  { %5533 = sst [smem:[#allocation10_spill]] %s5515_s4 }
   0x6   :  { %5534 = sst [smem:[#allocation11_spill]] %s5516_s5 }
   0x7   :  { %22 = vsyncpa [#allocation4], 0 }
   0x8   :  { %24 = vsyncpa [#allocation4 + $0x1], 0  ;;  %s4606_s15 = smov 0   ;;  %s4608_s16 = smov 0  }
   0x9   :  { %s4610_s17 = smov 0   ;;  %s4612_s18 = smov 0  }
   0xa LB: > { %s4627_s12 = sadd.s32 4294967295, %s4522_s18   ;;  %s3543_s19 = sadd.s32 4294967294, %s4522_s18   ;;  %s4522_s18 = sphi %s4612_s18, %s5549_s18   ;;  %s4518_s17 = sphi %s4610_s17, %s5548_s17   ;;  %s4514_s16 = sphi %s4608_s16, %s5547_s16   ;;  %s4510_s15 = sphi %s4606_s15, %s5546_s15  }
   0xb   : > { %s4631_s20 = sadd.s32 1, %s4522_s18   ;;  %s315_s21 = sadd.s32 1, %s4518_s17 }
   0xc   : > { %s312_s22 = ssub.s32 %s4522_s18, %s4631_s20  ;;  %p325_p0 = scmp.ne.s32.totalorder %s4518_s17, %s4514_s16 }
   0xd   : > { %p313_p1 = scmp.eq.s32.totalorder %s312_s22, 0  ;;  %p326_p2 = scmp.eq.s32.totalorder %s4627_s12, 1 }
   0xe   : > { %p331_p3 = scmp.ne.s32.totalorder %s4514_s16, %s4510_s15  ;;  %p332_p4 = scmp.eq.s32.totalorder %s3543_s19, 1 }
   0xf   : > { %s4642_s23 = scalar_select %p313_p1, %s4518_s17, %s315_s21  }
  0x10   : > { %p4644_p5 = por %p326_p2, %p325_p0  ;;  %p4648_p6 = por %p332_p4, %p331_p3 }
  0x11   : > { %p3546_p7 = scmp.ge.s32.totalorder %s4522_s18, 1  ;;  %p420_p8 = scmp.lt.s32.totalorder %s4522_s18, 3 }
  0x13   : > { %p421_p9 = pnand %p3546_p7, %p420_p8 }
  0x14   : > { %p471_p10 = scmp.lt.s32.totalorder (!%p421_p9), %s4627_s12, 1  ;;  %s5537_s0 = sld [smem:[#allocation6_spill]] (!%p421_p9) }
  0x15   : > { %424 = sbr.rel (%p421_p9) target bundleno = 3224 (0xc98), region = 72  ;;  %s5538_s1 = sld [smem:[#allocation7_spill]] (!%p421_p9) }
  0x16   : > { %s5539_s3 = sld [smem:[#allocation9_spill]] (!%p421_p9)  ;;  %s5527_s28 = sand.u32 (!%p421_p9), 1, %s4514_s16  }
  0x17   : > { %s5540_s2 = sld [smem:[#allocation8_spill]] (!%p421_p9)  ;;  %s5070_s29 = sshll.u32 (!%p421_p9), %s5527_s28, 3 }
  0x18   : > { %s5541_s5 = sld [smem:[#allocation11_spill]] (!%p421_p9)  ;;  %s5528_s19 = scalar_lea.vmem (!%p421_p9), [#allocation3], %s5070_s29 }
  0x19   : > { %s5542_s4 = sld [smem:[#allocation10_spill]] (!%p421_p9)  ;;  %s5543_s28 = scalar_lea.vmem (!%p421_p9), [#allocation3], %s5070_s29 }
  0x1a   : > { %v4524_v1 = vmov 0   ;;  %s4656_s26 = scalar_select %p471_p10, %s4627_s12, 1  ;;  %v491_v6 = vlaneseq  ;;  %v4525_v15 = vmov 0.0   ;;  %vm570_vm1 = vcmask 523264  }
  0x1b   : > { %4461 = vset.pattern.permute.xlu1 %v4524_v1  ;;  %4460 = vset.pattern.permute.xlu0 %v4524_v1  ;;  %v489_v20 = vld [vmem:[%s5538_s1] sm:$0x7]  ;;  %vm949_vm13 = vcmask 261120   ;;  %vm4526_vm14 = vmmov 0   ;;  %vm1469_vm15 = vcmask 130048   ;;  %s3456_s1 = sshll.u32 %s5543_s28, 4  ;;  %s3457_s1 = int_to_ptr.vmem [resolvable:$true] %s3456_s1 }
  0x1c   : > { %s5526_s27 = sshll.u32 %s4656_s26, 6  ;;  %v4664_v9 = vshrl.u32 %v491_v6, 7  ;;  %v4669_v13 = vand.u32 127, %v491_v6 }
  0x1d   : > { %s475_s30 = scalar_lea.vmem %s5537_s0, %s5526_s27  ;;  %s3669_s0 = sshll.u32 %s4627_s12, 7 }
  0x1e   : > { %v488_v2 = vld [vmem:[%s475_s30 + $0x38] sm:$0xff]  ;;  %v486_v3 = vld [vmem:[%s475_s30 + $0x28] sm:$0xff]  ;;  %v487_v4 = vld [vmem:[%s475_s30 + $0x30] sm:$0xff]  ;;  %v4667_v12 = vmul.u32 2, %v4664_v9  ;;  %v560_v18 = vsub.s32 0, %v4664_v9  ;;  %v692_v19 = vsub.s32 1, %v4664_v9  ;;  %s3454_s27 = scalar_lea.hbm %s5524_s13, %s3669_s0 }
  0x1f   : > { %555 = vperm.xlu0 %4460, %v488_v2   ;;  %545 = vperm.xlu1 %4461, %v486_v3   ;;  %v485_v5 = vld [vmem:[%s475_s30 + $0x20] sm:$0xff]  ;;  %v484_v7 = vld [vmem:[%s475_s30 + $0x18] sm:$0xff]  ;;  %v483_v8 = vld [vmem:[%s475_s30 + $0x10] sm:$0xff]  ;;  %v4701_v29 = vadd.s32 8, %v4664_v9  ;;  %v4706_v32 = vadd.s32 16, %v4664_v9  ;;  %v4716_v37 = vadd.s32 24, %v4664_v9 }
  0x20   : > { %v482_v10 = vld [vmem:[%s475_s30 + $0x8] sm:$0xff]  ;;  %v481_v11 = vld [vmem:[%s475_s30] sm:$0xff]  ;;  %v502_v14 = vadd.s32 4294967295, %v4667_v12  ;;  %vm678_vm2 = vcmp.eq.s32.totalorder %v4669_v13, %v4667_v12  ;;  %v561_v21 = vrot.slane %v489_v20, %v560_v18  ;;  %v693_v22 = vrot.slane %v489_v20, %v692_v19 }
  0x21   : > { %v4681_v17 = vsel %vm678_vm2, 1.0, %v4525_v15  ;;  %v4713_v36 = vmul.u32 2, %v4701_v29  ;;  %v4723_v41 = vmul.u32 2, %v4706_v32  ;;  %v821_v42 = vsub.s32 2, %v4664_v9 }
  0x22   : > { %vm506_vm0 = vcmp.eq.s32.totalorder %v4669_v13, %v502_v14  ;;  %3967 = vmatprep.mubr.msk.f32.mxu1 %vm570_vm1, %v4681_v17  ;;  %v4730_v46 = vmul.u32 2, %v4716_v37  ;;  %v803_v58 = vadd.s32 1, %v4667_v12  ;;  %vm1969_vm2 = vcmask 64512  }
  0x23   : > { %550 = vperm.xlu0 %4460, %v487_v4   ;;  %540 = vperm.xlu1 %4461, %v485_v5   ;;  %v4674_v16 = vsel %vm506_vm0, 1.0, %v4525_v15  ;;  %v503_v45 = vadd.s32 4294967295, %v4713_v36  ;;  %v504_v50 = vadd.s32 4294967295, %v4723_v41  ;;  %v4737_v51 = vrot.slane %v489_v20, %v821_v42 }
  0x24   : > { %3945 = vmatprep.mubr.msk.f32.mxu0 %vm570_vm1, %v4674_v16  ;;  %v505_v55 = vadd.s32 4294967295, %v4730_v46  ;;  %vm679_vm4 = vcmp.eq.s32.totalorder %v4669_v13, %v4713_v36  ;;  %vm680_vm6 = vcmp.eq.s32.totalorder %v4669_v13, %v4723_v41  ;;  %vm681_vm8 = vcmp.eq.s32.totalorder %v4669_v13, %v4730_v46 }
  0x25   : > { %vm507_vm3 = vcmp.eq.s32.totalorder %v4669_v13, %v503_v45  ;;  %vm508_vm5 = vcmp.eq.s32.totalorder %v4669_v13, %v504_v50  ;;  %v4759_v61 = vsel %vm679_vm4, 1.0, %v4525_v15  ;;  %v3563_v0 = vsel %vm680_vm6, 1.0, %v4525_v15 }
  0x26   : > { %v4752_v59 = vsel %vm507_vm3, 1.0, %v4525_v15  ;;  %vm509_vm7 = vcmp.eq.s32.totalorder %v4669_v13, %v505_v55  ;;  %v3554_v62 = vsel %vm508_vm5, 1.0, %v4525_v15  ;;  %vm807_vm9 = vcmp.eq.s32.totalorder %v4669_v13, %v803_v58  ;;  %v937_v55 = vld [vmem:[%s5539_s3 + $0x8] sm:$0xff] }
  0x27   : > { %535 = vperm.xlu0 %4460, %v484_v7   ;;  %530 = vperm.xlu1 %4461, %v483_v8   ;;  %v3555_v1 = vsel %vm509_vm7, 1.0, %v4525_v15  ;;  %v3564_v3 = vsel %vm681_vm8, 1.0, %v4525_v15  ;;  %v4780_v4 = vsel %vm807_vm9, 1.0, %v4525_v15  ;;  %v804_v7 = vadd.s32 1, %v4713_v36 }
  0x28   : > { %v805_v8 = vadd.s32 1, %v4723_v41  ;;  %v806_v12 = vadd.s32 1, %v4730_v46 }
  0x29   : > { %vm808_vm10 = vcmp.eq.s32.totalorder %v4669_v13, %v804_v7 }
  0x2a   : > { %vm809_vm11 = vcmp.eq.s32.totalorder %v4669_v13, %v805_v8  ;;  %v4802_v18 = vsel %vm808_vm10, 1.0, %v4525_v15  ;;  %vm810_vm12 = vcmp.eq.s32.totalorder %v4669_v13, %v806_v12  ;;  %v1451_v8 = vld [vmem:[%s5541_s5 + $0x38] sm:$0xff]  ;;  %v1448_v12 = vld [vmem:[%s5541_s5 + $0x20] sm:$0xff] }
  0x2b   : > { %525 = vperm.xlu0 %4460, %v482_v10   ;;  %520 = vperm.xlu1 %4461, %v481_v11   ;;  %v3571_v19 = vsel %vm809_vm11, 1.0, %v4525_v15  ;;  %v3572_v20 = vsel %vm810_vm12, 1.0, %v4525_v15 }
  0x9a   : > { %v4690_v23 = vpop.permute.xlu0 %555  ;;  %v4692_v24 = vpop.permute.xlu1 %545 }
  0x9b   : > { %v569_v25 = vmul.f32 %v561_v21, %v4690_v23  ;;  %v701_v26 = vmul.f32 %v693_v22, %v4690_v23  ;;  %v567_v33 = vmul.f32 %v561_v21, %v4692_v24  ;;  %v699_v34 = vmul.f32 %v693_v22, %v4692_v24 }
  0x9c   : > { %v830_v60 = vmul.f32 %v4737_v51, %v4690_v23  ;;  %v828_v2 = vmul.f32 %v4737_v51, %v4692_v24 }
  0x9d   : > { %3929 = vmatprep.subr.mxu0 %v569_v25  ;;  %3951 = vmatprep.subr.mxu1 %v701_v26 }
  0x9e   : > { %v4696_v27 = vpop.permute.xlu0 %550  ;;  %v4698_v28 = vpop.permute.xlu1 %540  ;;  %3930 = vmatpush3.msra.mxu0 %v569_v25  ;;  %3952 = vmatpush3.msra.mxu1 %v701_v26 }
  0x9f   : > { %v568_v30 = vmul.f32 %v561_v21, %v4696_v27  ;;  %v700_v31 = vmul.f32 %v693_v22, %v4696_v27  ;;  %v566_v38 = vmul.f32 %v561_v21, %v4698_v28  ;;  %v698_v40 = vmul.f32 %v693_v22, %v4698_v28 }
  0xa0   : > { %v829_v63 = vmul.f32 %v4737_v51, %v4696_v27  ;;  %v827_v5 = vmul.f32 %v4737_v51, %v4698_v28  ;;  %v3560_v28 = vld [vmem:[%s5540_s2] ss:$0 sm:$0xff]  ;;  %s4462_s2 = scalar_lea.vmem %s3457_s1, 128 }
  0xa1   : > { %3931 = vmatprep.subr.mxu0 %v568_v30  ;;  %3953 = vmatprep.subr.mxu1 %v700_v31  ;;  %p4463_p11 = scmp.ne.s32.totalorder %s3457_s1, %s4462_s2 }
  0xa2   : > { %3932 = vmatpush3.msra.mxu0 %v568_v30  ;;  %3954 = vmatpush3.msra.mxu1 %v700_v31  ;;  %v4710_v35 = vpop.permute.xlu0 %535  ;;  %v4719_v39 = vpop.permute.xlu1 %530 }
  0xa3   : > { %3933 = vmatprep.subr.mxu0 %v567_v33  ;;  %3955 = vmatprep.subr.mxu1 %v699_v34  ;;  %v565_v43 = vmul.f32 %v561_v21, %v4710_v35  ;;  %v697_v44 = vmul.f32 %v693_v22, %v4710_v35  ;;  %v564_v48 = vmul.f32 %v561_v21, %v4719_v39  ;;  %p4464_p12 = pnand %p4463_p11, %p4644_p5 }
  0xa4   : > { %3934 = vmatpush3.msra.mxu0 %v567_v33  ;;  %3956 = vmatpush3.msra.mxu1 %v699_v34  ;;  %v696_v49 = vmul.f32 %v693_v22, %v4719_v39  ;;  %v826_v6 = vmul.f32 %v4737_v51, %v4710_v35  ;;  %v825_v10 = vmul.f32 %v4737_v51, %v4719_v39 }
  0xa5   : > { %3935 = vmatprep.subr.mxu0 %v566_v38  ;;  %3957 = vmatprep.subr.mxu1 %v698_v40  ;;  %p4465_p13 = pneg %p4464_p12 }
  0xa6   : > { %3936 = vmatpush3.msra.mxu0 %v566_v38  ;;  %3958 = vmatpush3.msra.mxu1 %v698_v40  ;;  %v4732_v47 = vpop.permute.xlu0 %525  ;;  %v4739_v52 = vpop.permute.xlu1 %520 }
  0xa7   : > { %3937 = vmatprep.subr.mxu0 %v565_v43  ;;  %3959 = vmatprep.subr.mxu1 %v697_v44  ;;  %v563_v53 = vmul.f32 %v561_v21, %v4732_v47  ;;  %v695_v54 = vmul.f32 %v693_v22, %v4732_v47  ;;  %v562_v56 = vmul.f32 %v561_v21, %v4739_v52  ;;  %v939_v21 = vld [vmem:[%s5539_s3 + $0x18] sm:$0xff] }
  0xa8   : > { %3938 = vmatpush3.msra.mxu0 %v565_v43  ;;  %3960 = vmatpush3.msra.mxu1 %v697_v44  ;;  %v694_v57 = vmul.f32 %v693_v22, %v4739_v52  ;;  %v824_v11 = vmul.f32 %v4737_v51, %v4732_v47  ;;  %v823_v14 = vmul.f32 %v4737_v51, %v4739_v52  ;;  %v938_v22 = vld [vmem:[%s5539_s3 + $0x10] sm:$0xff] }
  0xa9   : > { %3939 = vmatprep.subr.mxu0 %v564_v48  ;;  %3961 = vmatprep.subr.mxu1 %v696_v49 }
  0xaa   : > { %3940 = vmatpush3.msra.mxu0 %v564_v48  ;;  %3962 = vmatpush3.msra.mxu1 %v696_v49 }
  0xab   : > { %3941 = vmatprep.subr.mxu0 %v563_v53  ;;  %3963 = vmatprep.subr.mxu1 %v695_v54 }
  0xac   : > { %3942 = vmatpush3.msra.mxu0 %v563_v53  ;;  %3964 = vmatpush3.msra.mxu1 %v695_v54 }
  0xad   : > { %3943 = vmatprep.subr.mxu0 %v562_v56  ;;  %3965 = vmatprep.subr.mxu1 %v694_v57 }
  0xae   : > { %3944 = vmatpush3.msra.mxu0 %v562_v56  ;;  %3966 = vmatpush3.msra.mxu1 %v694_v57  ;;  %v936_v56 = vld [vmem:[%s5539_s3] sm:$0xff]  ;;  %v943_v57 = vld [vmem:[%s5539_s3 + $0x38] sm:$0xff] }
  0xaf   : > { %3946 = vmatmul.mubr.msk.f32.vlgmr.msra.gmra.mxu0 %vm570_vm1, %v4752_v59  ;;  %3973 = vmatprep.subr.mxu0 %v830_v60 }
  0xb0   : > { %3974 = vmatpush3.msra.mxu0 %v830_v60  ;;  %3968 = vmatmul.mubr.msk.f32.vlgmr.msra.gmra.mxu1 %vm570_vm1, %v4759_v61  ;;  %v942_v60 = vld [vmem:[%s5539_s3 + $0x30] sm:$0xff] }
  0xb1   : > { %3975 = vmatprep.subr.mxu0 %v829_v63  ;;  %3948 = vmatprep.mubr.msk.f32.mxu0 %vm570_vm1, %v3554_v62  ;;  %v940_v62 = vld [vmem:[%s5539_s3 + $0x20] sm:$0xff] }
  0xb2   : > { %3976 = vmatpush3.msra.mxu0 %v829_v63  ;;  %3970 = vmatprep.mubr.msk.f32.mxu1 %vm570_vm1, %v3563_v0  ;;  %v947_v0 = vld [vmem:[%s5539_s3 + $0x58] sm:$0xff] }
  0xb3   : > { %3977 = vmatprep.subr.mxu0 %v828_v2  ;;  %3949 = vmatmul.mubr.msk.f32.gmra.mxu0 %vm570_vm1, %v3555_v1 }
  0xb4   : > { %3978 = vmatpush3.msra.mxu0 %v828_v2  ;;  %3971 = vmatmul.mubr.msk.f32.gmra.mxu1 %vm570_vm1, %v3564_v3  ;;  %v946_v2 = vld [vmem:[%s5539_s3 + $0x50] sm:$0xff]  ;;  %v945_v3 = vld [vmem:[%s5539_s3 + $0x48] sm:$0xff] }
  0xb5   : > { %3979 = vmatprep.subr.mxu0 %v827_v5  ;;  %3989 = vmatprep.mubr.msk.f32.mxu0 %vm570_vm1, %v4780_v4 }
  0xb6   : > { %3980 = vmatpush3.msra.mxu0 %v827_v5  ;;  %4006 = vmatprep.subr.mxu1 %v939_v21  ;;  %v944_v5 = vld [vmem:[%s5539_s3 + $0x40] sm:$0xff] }
  0xb7   : > { %3981 = vmatprep.subr.mxu0 %v826_v6  ;;  %4007 = vmatpush3.msra.mxu1 %v939_v21 }
  0xb8   : > { %3982 = vmatpush3.msra.mxu0 %v826_v6  ;;  %4008 = vmatprep.subr.mxu1 %v938_v22 }
  0xb9   : > { %3983 = vmatprep.subr.mxu0 %v825_v10  ;;  %4009 = vmatpush3.msra.mxu1 %v938_v22 }
  0xba   : > { %3984 = vmatpush3.msra.mxu0 %v825_v10  ;;  %4010 = vmatprep.subr.mxu1 %v937_v55  ;;  %v1450_v10 = vld [vmem:[%s5541_s5 + $0x30] sm:$0xff] }
  0xbb   : > { %3985 = vmatprep.subr.mxu0 %v824_v11  ;;  %4011 = vmatpush3.msra.mxu1 %v937_v55  ;;  %v1460_v55 = vld [vmem:[%s5541_s5 + $0x80] sm:$0xff] }
  0xbc   : > { %3986 = vmatpush3.msra.mxu0 %v824_v11  ;;  %4012 = vmatprep.subr.mxu1 %v936_v56  ;;  %v1449_v11 = vld [vmem:[%s5541_s5 + $0x28] sm:$0xff] }
  0xbd   : > { %3987 = vmatprep.subr.mxu0 %v823_v14  ;;  %4013 = vmatpush3.msra.mxu1 %v936_v56  ;;  %v3592_v56 = vld [vmem:[%s5517_s6] ss:$0 sm:$0xff] }
  0xbe   : > { %3988 = vmatpush3.msra.mxu0 %v823_v14  ;;  %4028 = vmatprep.subr.mxu1 %v943_v57  ;;  %v1447_v14 = vld [vmem:[%s5541_s5 + $0x18] sm:$0xff] }
  0xbf   : > { %3990 = vmatmul.mubr.msk.f32.vlgmr.msra.gmra.mxu0 %vm570_vm1, %v4802_v18 }
  0xc0   : > { %3992 = vmatprep.mubr.msk.f32.mxu0 %vm570_vm1, %v3571_v19  ;;  %v1445_v19 = vld [vmem:[%s5541_s5 + $0x8] sm:$0xff] }
  0xc3   : > { %3993 = vmatmul.mubr.msk.f32.gmra.mxu0 %vm570_vm1, %v3572_v20  ;;  %v1444_v20 = vld [vmem:[%s5541_s5] sm:$0xff] }
  0xc4   : > { %4003 = vmatprep.mubr.msk.f32.mxu0 %vm949_vm13, %v4674_v16 }
 0x16f   : > { %v3947_v23 = vpop.f32.mrf.mxu0 }
 0x170   : > { %v3969_v25 = vpop.f32.mrf.mxu1  ;;  %v675_v35 = vadd.f32 %v3947_v23, %v3560_v28  ;;  %v3581_v23 = vld [vmem:[%s5542_s4] ss:$0 sm:$0xff] }
 0x171   : > { %v649_v24 = vpop.f32.mrf.mxu0 }
 0x172   : > { %v780_v27 = vpop.f32.mrf.mxu1  ;;  %v674_v40 = vadd.f32 %v3560_v28, %v649_v24  ;;  %v800_v43 = vadd.f32 %v3969_v25, %v675_v35 }
 0x173   : > { %v3950_v26 = vpop.f32.mrf.mxu0 }
 0x174   : > { %v3972_v31 = vpop.f32.mrf.mxu1  ;;  %v677_v33 = vadd.f32 %v3950_v26, %v3560_v28  ;;  %v799_v47 = vadd.f32 %v780_v27, %v674_v40  ;;  %v1457_v40 = vld [vmem:[%s5541_s5 + $0x68] sm:$0xff] }
 0x175   : > { %v659_v30 = vpop.f32.mrf.mxu0 }
 0x176   : > { %v676_v36 = vadd.f32 %v3560_v28, %v659_v30  ;;  %v790_v38 = vpop.f32.mrf.mxu1  ;;  %v802_v41 = vadd.f32 %v3972_v31, %v677_v33 }
 0x178   : > { %v801_v44 = vadd.f32 %v790_v38, %v676_v36 }
 0x17f   : > { %v3991_v34 = vpop.f32.mrf.mxu0 }
 0x180   : > { %v929_v48 = vadd.f32 %v3991_v34, %v800_v43  ;;  %v1453_v43 = vld [vmem:[%s5541_s5 + $0x48] sm:$0xff] }
 0x181   : > { %v909_v39 = vpop.f32.mrf.mxu0 }
 0x182   : > { %v928_v51 = vadd.f32 %v909_v39, %v799_v47  ;;  %v933_v53 = vmax.f32 %v929_v48, 0.0  ;;  %v1459_v39 = vld [vmem:[%s5541_s5 + $0x78] sm:$0xff] }
 0x183   : > { %v3994_v42 = vpop.f32.mrf.mxu0  ;;  %v1467_v48 = vld [vmem:[%s5541_s5 + $0xb8] sm:$0xff] }
 0x184   : > { %v931_v45 = vadd.f32 %v3994_v42, %v802_v41  ;;  %v932_v54 = vmax.f32 %v928_v51, 0.0  ;;  %v1455_v41 = vld [vmem:[%s5541_s5 + $0x58] sm:$0xff]  ;;  %v1454_v42 = vld [vmem:[%s5541_s5 + $0x50] sm:$0xff]  ;;  %v1464_v51 = vld [vmem:[%s5541_s5 + $0xa0] sm:$0xff] }
 0x185   : > { %v919_v46 = vpop.f32.mrf.mxu0 }
 0x186   : > { %v935_v49 = vmax.f32 %v931_v45, 0.0  ;;  %v930_v50 = vadd.f32 %v919_v46, %v801_v44  ;;  %v1452_v44 = vld [vmem:[%s5541_s5 + $0x40] sm:$0xff] }
 0x188   : > { %v934_v52 = vmax.f32 %v930_v50, 0.0  ;;  %3995 = vmatprep.subr.mxu0 %v935_v49 }
 0x189   : > { %3996 = vmatpush3.msra.mxu0 %v935_v49 }
 0x18a   : > { %3997 = vmatprep.subr.mxu0 %v934_v52 }
 0x18b   : > { %3998 = vmatpush3.msra.mxu0 %v934_v52 }
 0x18c   : > { %3999 = vmatprep.subr.mxu0 %v933_v53 }
 0x18d   : > { %4000 = vmatpush3.msra.mxu0 %v933_v53 }
 0x18e   : > { %4001 = vmatprep.subr.mxu0 %v932_v54 }
 0x18f   : > { %4002 = vmatpush3.msra.mxu0 %v932_v54 }
 0x190   : > { %4004 = vmatmul.mubr.msk.f32.vlgmr.msra.gmra.mxu0 %vm949_vm13, %v4752_v59  ;;  %4017 = vmatprep.subr.mxu0 %v935_v49 }
 0x191   : > { %4018 = vmatpush3.msra.mxu0 %v935_v49  ;;  %4025 = vmatprep.mubr.msk.f32.mxu0 %vm949_vm13, %v4681_v17 }
 0x192   : > { %4019 = vmatprep.subr.mxu0 %v934_v52 }
 0x193   : > { %4020 = vmatpush3.msra.mxu0 %v934_v52 }
 0x194   : > { %4021 = vmatprep.subr.mxu0 %v933_v53 }
 0x195   : > { %4022 = vmatpush3.msra.mxu0 %v933_v53 }
 0x196   : > { %4023 = vmatprep.subr.mxu0 %v932_v54 }
 0x197   : > { %4024 = vmatpush3.msra.mxu0 %v932_v54 }
 0x198   : > { %4026 = vmatmul.mubr.msk.f32.vlgmr.msra.gmra.mxu0 %vm949_vm13, %v4759_v61  ;;  %4039 = vmatprep.subr.mxu0 %v935_v49  ;;  %v941_v61 = vld [vmem:[%s5539_s3 + $0x28] sm:$0xff]  ;;  %s4527_s3 = smov [#allocation3]  }
 0x199   : > { %4040 = vmatpush3.msra.mxu0 %v935_v49  ;;  %4047 = vmatprep.mubr.msk.f32.mxu0 %vm949_vm13, %v4780_v4  ;;  %v1466_v49 = vld [vmem:[%s5541_s5 + $0xb0] sm:$0xff]  ;;  %s4466_s4 = sshll.u32 %s4527_s3, 4  ;;  %s4467_s4 = int_to_ptr.vmem [resolvable:$false] %s4466_s4 }
 0x19a   : > { %4041 = vmatprep.subr.mxu0 %v934_v52  ;;  %p4469_p0 = scmp.lt.s32.totalorder %s3457_s1, %s4467_s4 }
 0x19b   : > { %4042 = vmatpush3.msra.mxu0 %v934_v52  ;;  %v1463_v52 = vld [vmem:[%s5541_s5 + $0x98] sm:$0xff] }
 0x19c   : > { %4043 = vmatprep.subr.mxu0 %v933_v53 }
 0x19d   : > { %4044 = vmatpush3.msra.mxu0 %v933_v53  ;;  %v1462_v53 = vld [vmem:[%s5541_s5 + $0x90] sm:$0xff] }
 0x19e   : > { %4045 = vmatprep.subr.mxu0 %v932_v54 }
 0x19f   : > { %4046 = vmatpush3.msra.mxu0 %v932_v54  ;;  %v1461_v54 = vld [vmem:[%s5541_s5 + $0x88] sm:$0xff] }
 0x1a0   : > { %4048 = vmatmul.mubr.msk.f32.vlgmr.msra.gmra.mxu0 %vm949_vm13, %v4802_v18  ;;  %4061 = vmatprep.subr.mxu0 %v4525_v15  ;;  %v1446_v18 = vld [vmem:[%s5541_s5 + $0x10] sm:$0xff] }
 0x1a1   : > { %4065 = vmatprep.mubr.msk.f32.mxu0 %vm4526_vm14, %v4525_v15 }
 0x250   : > { %v4005_v58 = vpop.f32.mrf.mxu0 }
 0x252   : > { %v1020_v59 = vpop.f32.mrf.mxu0 }
 0x253   : > { %4014 = vmatprep.mubr.msk.f32.mxu1 %vm949_vm13, %v1020_v59 }
 0x254   : > { %4015 = vmatmul.mubr.msk.f32.vlgmr.msra.gmra.mxu1 %vm949_vm13, %v4005_v58 }
 0x255   : > { %4029 = vmatpush3.msra.mxu1 %v943_v57 }
 0x256   : > { %4030 = vmatprep.subr.mxu1 %v942_v60 }
 0x257   : > { %4031 = vmatpush3.msra.mxu1 %v942_v60  ;;  %v1963_v60 = vld [vmem:[%s5518_s7 + $0x178] sm:$0xff] }
 0x258   : > { %v4027_v63 = vpop.f32.mrf.mxu0  ;;  %4032 = vmatprep.subr.mxu1 %v941_v61 }
 0x259   : > { %4033 = vmatpush3.msra.mxu1 %v941_v61 }
 0x25a   : > { %v1188_v1 = vpop.f32.mrf.mxu0  ;;  %4034 = vmatprep.subr.mxu1 %v940_v62 }
 0x25b   : > { %4035 = vmatpush3.msra.mxu1 %v940_v62  ;;  %4036 = vmatprep.mubr.msk.f32.mxu1 %vm949_vm13, %v1188_v1 }
 0x25c   : > { %4037 = vmatmul.mubr.msk.f32.vlgmr.msra.gmra.mxu1 %vm949_vm13, %v4027_v63  ;;  %4050 = vmatprep.subr.mxu1 %v947_v0 }
 0x25d   : > { %4051 = vmatpush3.msra.mxu1 %v947_v0  ;;  %v1962_v0 = vld [vmem:[%s5518_s7 + $0x170] sm:$0xff] }
 0x25e   : > { %4052 = vmatprep.subr.mxu1 %v946_v2 }
 0x25f   : > { %4053 = vmatpush3.msra.mxu1 %v946_v2 }
 0x260   : > { %v4049_v6 = vpop.f32.mrf.mxu0  ;;  %4054 = vmatprep.subr.mxu1 %v945_v3 }
 0x261   : > { %4055 = vmatpush3.msra.mxu1 %v945_v3  ;;  %v1961_v3 = vld [vmem:[%s5518_s7 + $0x168] sm:$0xff] }
 0x262   : > { %v1350_v7 = vpop.f32.mrf.mxu0  ;;  %4056 = vmatprep.subr.mxu1 %v944_v5 }
 0x263   : > { %4057 = vmatpush3.msra.mxu1 %v944_v5  ;;  %4058 = vmatprep.mubr.msk.f32.mxu1 %vm949_vm13, %v1350_v7  ;;  %v1960_v5 = vld [vmem:[%s5518_s7 + $0x160] sm:$0xff]  ;;  %v1958_v7 = vld [vmem:[%s5518_s7 + $0x150] sm:$0xff] }
 0x264   : > { %4059 = vmatmul.mubr.msk.f32.vlgmr.msra.gmra.mxu1 %vm949_vm13, %v4049_v6  ;;  %4068 = vmatprep.subr.mxu1 %v4525_v15  ;;  %v1959_v6 = vld [vmem:[%s5518_s7 + $0x158] sm:$0xff] }
 0x265   : > { %4084 = vmatprep.mubr.msk.f32.mxu1 %vm4526_vm14, %v4525_v15  ;;  %4069 = vmatpush3.msra.mxu1 %v1451_v8  ;;  %v1957_v8 = vld [vmem:[%s5518_s7 + $0x148] sm:$0xff] }
 0x266   : > { %4070 = vmatprep.subr.mxu1 %v4525_v15 }
 0x267   : > { %4071 = vmatpush3.msra.mxu1 %v1450_v10  ;;  %v1956_v10 = vld [vmem:[%s5518_s7 + $0x140] sm:$0xff] }
 0x268   : > { %4072 = vmatprep.subr.mxu1 %v4525_v15 }
 0x269   : > { %4073 = vmatpush3.msra.mxu1 %v1449_v11  ;;  %v1955_v11 = vld [vmem:[%s5518_s7 + $0x138] sm:$0xff] }
 0x26a   : > { %4074 = vmatprep.subr.mxu1 %v4525_v15 }
 0x26b   : > { %4075 = vmatpush3.msra.mxu1 %v1448_v12  ;;  %v1954_v12 = vld [vmem:[%s5518_s7 + $0x130] sm:$0xff] }
 0x26c   : > { %4076 = vmatprep.subr.mxu1 %v4525_v15 }
 0x26d   : > { %4077 = vmatpush3.msra.mxu1 %v1447_v14  ;;  %v1953_v14 = vld [vmem:[%s5518_s7 + $0x128] sm:$0xff] }
 0x26e   : > { %4078 = vmatprep.subr.mxu1 %v4525_v15 }
 0x26f   : > { %4079 = vmatpush3.msra.mxu1 %v1446_v18  ;;  %v1952_v18 = vld [vmem:[%s5518_s7 + $0x120] sm:$0xff] }
 0x270   : > { %4080 = vmatprep.subr.mxu1 %v4525_v15 }
 0x271   : > { %4081 = vmatpush3.msra.mxu1 %v1445_v19  ;;  %v1951_v19 = vld [vmem:[%s5518_s7 + $0x118] sm:$0xff] }
 0x272   : > { %4082 = vmatprep.subr.mxu1 %v4525_v15 }
 0x273   : > { %4083 = vmatpush3.msra.mxu1 %v1444_v20  ;;  %v1950_v20 = vld [vmem:[%s5518_s7 + $0x110] sm:$0xff] }
 0x274   : > { %4113 = vmatprep.subr.mxu1 %v4525_v15 }
 0x314   : > { %v4016_v21 = vpop.f32.mrf.mxu1 }
 0x315   : > { %v1117_v25 = vadd.f32 %v4016_v21, %v3581_v23  ;;  %v1949_v21 = vld [vmem:[%s5518_s7 + $0x108] sm:$0xff] }
 0x316   : > { %v1101_v22 = vpop.f32.mrf.mxu1 }
 0x317   : > { %v1116_v27 = vadd.f32 %v3581_v23, %v1101_v22  ;;  %v1948_v22 = vld [vmem:[%s5518_s7 + $0x100] sm:$0xff]  ;;  %v1965_v23 = vadd.s32 1, %v4664_v9 }
 0x319   : > { %vm1966_vm0 = vcmp.eq.s32.totalorder %v4669_v13, %v1965_v23 }
 0x31c   : > { %v4038_v24 = vpop.f32.mrf.mxu1 }
 0x31d   : > { %v1279_v28 = vadd.f32 %v4038_v24, %v1117_v25 }
 0x31e   : > { %v1269_v26 = vpop.f32.mrf.mxu1 }
 0x31f   : > { %v1278_v31 = vadd.f32 %v1269_v26, %v1116_v27 }
 0x324   : > { %v4060_v30 = vpop.f32.mrf.mxu1 }
 0x325   : > { %v1441_v33 = vadd.f32 %v4060_v30, %v1279_v28  ;;  %v5074_v28 = vsel %vm1966_vm0, 1.0, %v4525_v15  ;;  %v1931_v30 = vld [vmem:[%s5518_s7 + $0x78] sm:$0xff] }
 0x326   : > { %v1431_v34 = vpop.f32.mrf.mxu1 }
 0x327   : > { %v1443_v35 = vmax.f32 %v1441_v33, 0.0  ;;  %v1440_v36 = vadd.f32 %v1431_v34, %v1278_v31  ;;  %v1930_v31 = vld [vmem:[%s5518_s7 + $0x70] sm:$0xff]  ;;  %v1929_v33 = vld [vmem:[%s5518_s7 + $0x68] sm:$0xff]  ;;  %v1928_v34 = vld [vmem:[%s5518_s7 + $0x60] sm:$0xff] }
 0x329   : > { %v1442_v38 = vmax.f32 %v1440_v36, 0.0  ;;  %4062 = vmatpush3.msra.mxu0 %v1443_v35  ;;  %v1926_v36 = vld [vmem:[%s5518_s7 + $0x50] sm:$0xff] }
 0x32a   : > { %4063 = vmatprep.subr.mxu0 %v4525_v15 }
 0x32b   : > { %4064 = vmatpush3.msra.mxu0 %v1442_v38 }
 0x32c   : > { %4066 = vmatmul.mubr.msk.f32.vlgmr.msra.gmra.mxu0 %vm1469_vm15, %v4674_v16  ;;  %4087 = vmatprep.subr.mxu0 %v4525_v15  ;;  %v1458_v16 = vld [vmem:[%s5541_s5 + $0x70] sm:$0xff] }
 0x32d   : > { %4088 = vmatpush3.msra.mxu0 %v1443_v35  ;;  %4091 = vmatprep.mubr.msk.f32.mxu0 %vm4526_vm14, %v4525_v15 }
 0x32e   : > { %4089 = vmatprep.subr.mxu0 %v4525_v15 }
 0x32f   : > { %4090 = vmatpush3.msra.mxu0 %v1442_v38 }
 0x330   : > { %4092 = vmatmul.mubr.msk.f32.vlgmr.msra.gmra.mxu0 %vm1469_vm15, %v4681_v17  ;;  %4094 = vmatprep.subr.mxu0 %v4525_v15  ;;  %v1456_v17 = vld [vmem:[%s5541_s5 + $0x60] sm:$0xff] }
 0x331   : > { %4095 = vmatpush3.msra.mxu0 %v1459_v39  ;;  %4110 = vmatprep.mubr.msk.f32.mxu0 %vm4526_vm14, %v4525_v15  ;;  %v1924_v39 = vld [vmem:[%s5518_s7 + $0x40] sm:$0xff] }
 0x332   : > { %4096 = vmatprep.subr.mxu0 %v4525_v15 }
 0x333   : > { %4097 = vmatpush3.msra.mxu0 %v1458_v16  ;;  %v1923_v16 = vld [vmem:[%s5518_s7 + $0x38] sm:$0xff] }
 0x334   : > { %4098 = vmatprep.subr.mxu0 %v4525_v15 }
 0x335   : > { %4099 = vmatpush3.msra.mxu0 %v1457_v40  ;;  %v1922_v40 = vld [vmem:[%s5518_s7 + $0x30] sm:$0xff] }
 0x336   : > { %4100 = vmatprep.subr.mxu0 %v4525_v15 }
 0x337   : > { %4101 = vmatpush3.msra.mxu0 %v1456_v17  ;;  %v1921_v17 = vld [vmem:[%s5518_s7 + $0x28] sm:$0xff] }
 0x338   : > { %4102 = vmatprep.subr.mxu0 %v4525_v15 }
 0x339   : > { %4103 = vmatpush3.msra.mxu0 %v1455_v41  ;;  %v1920_v41 = vld [vmem:[%s5518_s7 + $0x20] sm:$0xff] }
 0x33a   : > { %4104 = vmatprep.subr.mxu0 %v4525_v15 }
 0x33b   : > { %4105 = vmatpush3.msra.mxu0 %v1454_v42  ;;  %v1919_v42 = vld [vmem:[%s5518_s7 + $0x18] sm:$0xff] }
 0x33c   : > { %4106 = vmatprep.subr.mxu0 %v4525_v15 }
 0x33d   : > { %4107 = vmatpush3.msra.mxu0 %v1453_v43  ;;  %v1918_v43 = vld [vmem:[%s5518_s7 + $0x10] sm:$0xff] }
 0x33e   : > { %4108 = vmatprep.subr.mxu0 %v4525_v15 }
 0x33f   : > { %4109 = vmatpush3.msra.mxu0 %v1452_v44  ;;  %v1917_v44 = vld [vmem:[%s5518_s7 + $0x8] sm:$0xff] }
 0x340   : > { %4139 = vmatprep.subr.mxu0 %v4525_v15 }
 0x3ec   : > { %v1538_v45 = vpop.f32.mrf.mxu0 }
 0x3ed   : > { %4085 = vmatmul.mubr.msk.f32.vlgmr.msra.gmra.mxu1 %vm570_vm1, %v1538_v45  ;;  %v1916_v45 = vld [vmem:[%s5518_s7] sm:$0xff] }
 0x3ee   : > { %4114 = vmatpush3.msra.mxu1 %v1443_v35  ;;  %v4067_v46 = vpop.f32.mrf.mxu0  ;;  %4117 = vmatprep.mubr.msk.f32.mxu1 %vm4526_vm14, %v4525_v15  ;;  %v1927_v35 = vld [vmem:[%s5518_s7 + $0x58] sm:$0xff] }
 0x3ef   : > { %4115 = vmatprep.subr.mxu1 %v4525_v15  ;;  %v1947_v46 = vld [vmem:[%s5518_s7 + $0xf8] sm:$0xff] }
 0x3f0   : > { %4116 = vmatpush3.msra.mxu1 %v1442_v38  ;;  %v1690_v47 = vpop.f32.mrf.mxu0  ;;  %v1925_v38 = vld [vmem:[%s5518_s7 + $0x48] sm:$0xff] }
 0x3f1   : > { %4111 = vmatmul.mubr.msk.f32.vlgmr.msra.gmra.mxu0 %vm570_vm1, %v1690_v47  ;;  %4118 = vmatmul.mubr.msk.f32.vlgmr.msra.gmra.mxu1 %vm1469_vm15, %v4780_v4  ;;  %v1465_v4 = vld [vmem:[%s5541_s5 + $0xa8] sm:$0xff]  ;;  %v1946_v47 = vld [vmem:[%s5518_s7 + $0xf0] sm:$0xff]  ;;  %s4468_s5 = scalar_lea.vmem %s4467_s4, 256 }
 0x3f2   : > { %4120 = vmatprep.subr.mxu1 %v4525_v15  ;;  %v4093_v50 = vpop.f32.mrf.mxu0  ;;  %4136 = vmatprep.mubr.msk.f32.mxu1 %vm4526_vm14, %v4525_v15  ;;  %p4470_p1 = scmp.lt.s32.totalorder %s4468_s5, %s4462_s2 }
 0x3f3   : > { %4121 = vmatpush3.msra.mxu1 %v1467_v48  ;;  %4141 = vmatprep.mubr.msk.f32.mxu0 %vm4526_vm14, %v4525_v15  ;;  %v1945_v48 = vld [vmem:[%s5518_s7 + $0xe8] sm:$0xff]  ;;  %v1943_v50 = vld [vmem:[%s5518_s7 + $0xd8] sm:$0xff] }
 0x3f4   : > { %4122 = vmatprep.subr.mxu1 %v4525_v15  ;;  %p4471_p2 = por %p4470_p1, %p4469_p0 }
 0x3f5   : > { %4123 = vmatpush3.msra.mxu1 %v1466_v49  ;;  %v1944_v49 = vld [vmem:[%s5518_s7 + $0xe0] sm:$0xff] }
 0x3f6   : > { %4124 = vmatprep.subr.mxu1 %v4525_v15  ;;  %p4472_p3 = pnand %p4471_p2, %p4465_p13 }
 0x3f7   : > { %4125 = vmatpush3.msra.mxu1 %v1465_v4  ;;  %v1942_v4 = vld [vmem:[%s5518_s7 + $0xd0] sm:$0xff] }
 0x3f8   : > { %4126 = vmatprep.subr.mxu1 %v4525_v15 }
 0x3f9   : > { %4127 = vmatpush3.msra.mxu1 %v1464_v51  ;;  %v1941_v51 = vld [vmem:[%s5518_s7 + $0xc8] sm:$0xff] }
 0x3fa   : > { %4128 = vmatprep.subr.mxu1 %v4525_v15 }
 0x3fb   : > { %4129 = vmatpush3.msra.mxu1 %v1463_v52  ;;  %v1940_v52 = vld [vmem:[%s5518_s7 + $0xc0] sm:$0xff] }
 0x3fc   : > { %4130 = vmatprep.subr.mxu1 %v4525_v15 }
 0x3fd   : > { %4131 = vmatpush3.msra.mxu1 %v1462_v53  ;;  %v1939_v53 = vld [vmem:[%s5518_s7 + $0xb8] sm:$0xff] }
 0x3fe   : > { %4132 = vmatprep.subr.mxu1 %v4525_v15 }
 0x3ff   : > { %4133 = vmatpush3.msra.mxu1 %v1461_v54  ;;  %v1938_v54 = vld [vmem:[%s5518_s7 + $0xb0] sm:$0xff] }
 0x400   : > { %4134 = vmatprep.subr.mxu1 %v4525_v15 }
 0x401   : > { %4135 = vmatpush3.msra.mxu1 %v1460_v55  ;;  %v1937_v55 = vld [vmem:[%s5518_s7 + $0xa8] sm:$0xff] }
 0x402   : > { %4179 = vmatprep.subr.mxu1 %v4525_v15 }
 0x4ad   : > { %v1611_v57 = vpop.f32.mrf.mxu1 }
 0x4ae   : > { %v1621_v59 = vadd.f32 %v3592_v56, %v1611_v57  ;;  %v1936_v56 = vld [vmem:[%s5518_s7 + $0xa0] sm:$0xff]  ;;  %v1935_v57 = vld [vmem:[%s5518_s7 + $0x98] sm:$0xff] }
 0x4af   : > { %v4086_v58 = vpop.f32.mrf.mxu1 }
 0x4b0   : > { %v1934_v58 = vld [vmem:[%s5518_s7 + $0x90] sm:$0xff] }
 0x4b1   : > { %v1763_v61 = vpop.f32.mrf.mxu0  ;;  %v1836_v62 = vpop.f32.mrf.mxu1 }
 0x4b2   : > { %v1767_v63 = vadd.f32 %v1763_v61, %v1621_v59  ;;  %4137 = vmatmul.mubr.msk.f32.vlgmr.msra.gmra.mxu1 %vm570_vm1, %v1836_v62  ;;  %v1933_v59 = vld [vmem:[%s5518_s7 + $0x88] sm:$0xff] }
 0x4b3   : > { %v4119_v1 = vpop.f32.mrf.mxu1  ;;  %4180 = vmatpush3.msra.mxu1 %v1963_v60  ;;  %v4112_v2 = vpop.f32.mrf.mxu0  ;;  %4211 = vmatprep.mubr.msk.f32.mxu1 %vm4526_vm14, %v4525_v15  ;;  %v1932_v60 = vld [vmem:[%s5518_s7 + $0x80] sm:$0xff] }
 0x4b4   : > { %4181 = vmatprep.subr.mxu1 %v4525_v15 }
 0x4b5   : > { %4182 = vmatpush3.msra.mxu1 %v1962_v0 }
 0x4b6   : > { %4183 = vmatprep.subr.mxu1 %v4525_v15 }
 0x4b7   : > { %4184 = vmatpush3.msra.mxu1 %v1961_v3  ;;  %v5213_v3 = vmul.u32 2, %v4669_v13 }
 0x4b8   : > { %4185 = vmatprep.subr.mxu1 %v4525_v15 }
 0x4b9   : > { %4186 = vmatpush3.msra.mxu1 %v1960_v5  ;;  %v3602_v5 = vadd.s32 4294967281, %v5213_v3  ;;  %vm2263_vm3 = vcmp.eq.s32.totalorder %v4664_v9, %v5213_v3  ;;  %vm2264_vm6 = vcmp.eq.s32.totalorder %v4701_v29, %v5213_v3  ;;  %vm2717_vm10 = vcmp.eq.s32.totalorder %v4706_v32, %v5213_v3 }
 0x4ba   : > { %4187 = vmatprep.subr.mxu1 %v4525_v15  ;;  %vm2718_vm12 = vcmp.eq.s32.totalorder %v4716_v37, %v5213_v3 }
 0x4bb   : > { %4188 = vmatpush3.msra.mxu1 %v1959_v6  ;;  %vm2270_vm4 = vcmp.eq.s32.totalorder %v4664_v9, %v3602_v5  ;;  %v5220_v6 = vsel %vm2263_vm3, 1.0, %v4525_v15  ;;  %vm2271_vm5 = vcmp.eq.s32.totalorder %v4701_v29, %v3602_v5 }
 0x4bc   : > { %4189 = vmatprep.subr.mxu1 %v4525_v15 }
 0x4bd   : > { %4190 = vmatpush3.msra.mxu1 %v1958_v7  ;;  %v3603_v7 = vsel %vm2270_vm4, 1.0, %v4525_v15 }
 0x4be   : > { %4191 = vmatprep.subr.mxu1 %v4525_v15 }
 0x4bf   : > { %4192 = vmatpush3.msra.mxu1 %v1957_v8  ;;  %v2276_v8 = vadd.f32 %v3603_v7, %v5220_v6 }
 0x4c0   : > { %4193 = vmatprep.subr.mxu1 %v4525_v15 }
 0x4c1   : > { %4194 = vmatpush3.msra.mxu1 %v1956_v10  ;;  %v2382_v10 = vld [vmem:[%s5520_s9 + $0xb8] sm:$0xff] }
 0x4c2   : > { %4195 = vmatprep.subr.mxu1 %v4525_v15 }
 0x4c3   : > { %4196 = vmatpush3.msra.mxu1 %v1955_v11  ;;  %v2381_v11 = vld [vmem:[%s5520_s9 + $0xb0] sm:$0xff] }
 0x4c4   : > { %4197 = vmatprep.subr.mxu1 %v4525_v15 }
 0x4c5   : > { %4198 = vmatpush3.msra.mxu1 %v1954_v12  ;;  %v2380_v12 = vld [vmem:[%s5520_s9 + $0xa8] sm:$0xff] }
 0x4c6   : > { %4199 = vmatprep.subr.mxu1 %v4525_v15 }
 0x4c7   : > { %4200 = vmatpush3.msra.mxu1 %v1953_v14  ;;  %v2379_v14 = vld [vmem:[%s5520_s9 + $0xa0] sm:$0xff] }
 0x4c8   : > { %4201 = vmatprep.subr.mxu1 %v4525_v15 }
 0x4c9   : > { %4202 = vmatpush3.msra.mxu1 %v1952_v18  ;;  %v2378_v18 = vld [vmem:[%s5520_s9 + $0x98] sm:$0xff] }
 0x4ca   : > { %4203 = vmatprep.subr.mxu1 %v4525_v15 }
 0x4cb   : > { %4204 = vmatpush3.msra.mxu1 %v1951_v19  ;;  %v2377_v19 = vld [vmem:[%s5520_s9 + $0x90] sm:$0xff] }
 0x4cc   : > { %4205 = vmatprep.subr.mxu1 %v4525_v15 }
 0x4cd   : > { %4206 = vmatpush3.msra.mxu1 %v1950_v20  ;;  %v3599_v20 = vld [vmem:[%s5519_s8] ss:$0 sm:$0xff] }
 0x4ce   : > { %4207 = vmatprep.subr.mxu1 %v4525_v15 }
 0x4cf   : > { %4208 = vmatpush3.msra.mxu1 %v1949_v21 }
 0x4d0   : > { %4209 = vmatprep.subr.mxu1 %v4525_v15 }
 0x4d1   : > { %4210 = vmatpush3.msra.mxu1 %v1948_v22 }
 0x572   : > { %v1909_v24 = vpop.f32.mrf.mxu1 }
 0x573   : > { %v1913_v25 = vadd.f32 %v1909_v24, %v1767_v63 }
 0x574   : > { %v4138_v26 = vpop.f32.mrf.mxu1 }
 0x575   : > { %v1914_v27 = vmax.f32 %v1913_v25, 0.0  ;;  %v5250_v26 = vsel %vm2264_vm6, 1.0, %v4525_v15 }
 0x577   : > { %4140 = vmatpush3.msra.mxu0 %v1914_v27  ;;  %4212 = vmatmul.mubr.f32.vlgmr.msra.gmra.mxu1 %v1914_v27  ;;  %1915 = vst [vmem:[%s5528_s19] sm:$0xff] %v1914_v27  ;;  %s5544_s19 = sand.u32 1, %s4514_s16  }
 0x578   : > { %4142 = vmatmul.mubr.msk.f32.vlgmr.msra.gmra.mxu0 %vm1969_vm2, %v5074_v28  ;;  %4144 = vmatprep.subr.mxu0 %v4525_v15  ;;  %s3438_s22 = scalar_lea.sflag [#allocation4], %s5544_s19 }
 0x579   : > { %4145 = vmatpush3.msra.mxu0 %v1931_v30  ;;  %4176 = vmatprep.mubr.msk.f32.mxu0 %vm4526_vm14, %v4525_v15 }
 0x57a   : > { %4146 = vmatprep.subr.mxu0 %v4525_v15  ;;  %4253 = vmatprep.mubr.msk.f32.mxu1 %vm1469_vm15, %v2276_v8 }
 0x57b   : > { %4147 = vmatpush3.msra.mxu0 %v1930_v31 }
 0x57c   : > { %4148 = vmatprep.subr.mxu0 %v4525_v15 }
 0x57d   : > { %4149 = vmatpush3.msra.mxu0 %v1929_v33 }
 0x57e   : > { %4150 = vmatprep.subr.mxu0 %v4525_v15 }
 0x57f   : > { %4151 = vmatpush3.msra.mxu0 %v1928_v34  ;;  %v2376_v34 = vld [vmem:[%s5520_s9 + $0x88] sm:$0xff] }
 0x580   : > { %4152 = vmatprep.subr.mxu0 %v4525_v15 }
 0x581   : > { %4153 = vmatpush3.msra.mxu0 %v1927_v35  ;;  %v2375_v35 = vld [vmem:[%s5520_s9 + $0x80] sm:$0xff] }
 0x582   : > { %4154 = vmatprep.subr.mxu0 %v4525_v15 }
 0x583   : > { %4155 = vmatpush3.msra.mxu0 %v1926_v36  ;;  %v2384_v36 = vadd.s32 1, %v4701_v29 }
 0x584   : > { %4156 = vmatprep.subr.mxu0 %v4525_v15 }
 0x585   : > { %4157 = vmatpush3.msra.mxu0 %v1925_v38  ;;  %vm2385_vm7 = vcmp.eq.s32.totalorder %v4669_v13, %v2384_v36 }
 0x586   : > { %4158 = vmatprep.subr.mxu0 %v4525_v15 }
 0x587   : > { %4159 = vmatpush3.msra.mxu0 %v1924_v39 }
 0x588   : > { %4160 = vmatprep.subr.mxu0 %v4525_v15 }
 0x589   : > { %4161 = vmatpush3.msra.mxu0 %v1923_v16  ;;  %v5266_v16 = vsel %vm2385_vm7, 1.0, %v4525_v15 }
 0x58a   : > { %4162 = vmatprep.subr.mxu0 %v4525_v15 }
 0x58b   : > { %4163 = vmatpush3.msra.mxu0 %v1922_v40  ;;  %v2366_v40 = vld [vmem:[%s5520_s9 + $0x38] sm:$0xff] }
 0x58c   : > { %4164 = vmatprep.subr.mxu0 %v4525_v15 }
 0x58d   : > { %4165 = vmatpush3.msra.mxu0 %v1921_v17  ;;  %v2365_v17 = vld [vmem:[%s5520_s9 + $0x30] sm:$0xff] }
 0x58e   : > { %4166 = vmatprep.subr.mxu0 %v4525_v15 }
 0x58f   : > { %4167 = vmatpush3.msra.mxu0 %v1920_v41  ;;  %v2364_v41 = vld [vmem:[%s5520_s9 + $0x28] sm:$0xff] }
 0x590   : > { %4168 = vmatprep.subr.mxu0 %v4525_v15 }
 0x591   : > { %4169 = vmatpush3.msra.mxu0 %v1919_v42  ;;  %v2363_v42 = vld [vmem:[%s5520_s9 + $0x20] sm:$0xff] }
 0x592   : > { %4170 = vmatprep.subr.mxu0 %v4525_v15 }
 0x593   : > { %4171 = vmatpush3.msra.mxu0 %v1918_v43  ;;  %v2362_v43 = vld [vmem:[%s5520_s9 + $0x18] sm:$0xff] }
 0x594   : > { %4172 = vmatprep.subr.mxu0 %v4525_v15 }
 0x595   : > { %4173 = vmatpush3.msra.mxu0 %v1917_v44  ;;  %v2361_v44 = vld [vmem:[%s5520_s9 + $0x10] sm:$0xff] }
 0x596   : > { %4174 = vmatprep.subr.mxu0 %v4525_v15 }
 0x597   : > { %4175 = vmatpush3.msra.mxu0 %v1916_v45  ;;  %v2360_v45 = vld [vmem:[%s5520_s9 + $0x8] sm:$0xff] }
 0x598   : > { %4177 = vmatmul.mubr.f32.vlgmr.msra.gmra.mxu0 %v1914_v27  ;;  %4214 = vmatprep.subr.mxu0 %v4525_v15  ;;  %v3604_v27 = vsel %vm2271_vm5, 1.0, %v4525_v15 }
 0x599   : > { %4215 = vmatpush3.msra.mxu0 %v1947_v46  ;;  %4246 = vmatprep.mubr.msk.f32.mxu0 %vm4526_vm14, %v4525_v15  ;;  %v2277_v33 = vadd.f32 %v3604_v27, %v5250_v26  ;;  %v2359_v46 = vld [vmem:[%s5520_s9] sm:$0xff]  ;;  %v2840_v27 = vld [vmem:[%s5522_s11 + $0x18] sm:$0xff] }
 0x59a   : > { %4216 = vmatprep.subr.mxu0 %v4525_v15 }
 0x59b   : > { %4217 = vmatpush3.msra.mxu0 %v1946_v47  ;;  %v2374_v47 = vld [vmem:[%s5520_s9 + $0x78] sm:$0xff] }
 0x59c   : > { %4218 = vmatprep.subr.mxu0 %v4525_v15 }
 0x59d   : > { %4219 = vmatpush3.msra.mxu0 %v1945_v48  ;;  %v2373_v48 = vld [vmem:[%s5520_s9 + $0x70] sm:$0xff] }
 0x59e   : > { %4220 = vmatprep.subr.mxu0 %v4525_v15 }
 0x59f   : > { %4221 = vmatpush3.msra.mxu0 %v1944_v49  ;;  %v2372_v49 = vld [vmem:[%s5520_s9 + $0x68] sm:$0xff] }
 0x5a0   : > { %4222 = vmatprep.subr.mxu0 %v4525_v15 }
 0x5a1   : > { %4223 = vmatpush3.msra.mxu0 %v1943_v50  ;;  %v2371_v50 = vld [vmem:[%s5520_s9 + $0x60] sm:$0xff] }
 0x5a2   : > { %4224 = vmatprep.subr.mxu0 %v4525_v15 }
 0x5a3   : > { %4225 = vmatpush3.msra.mxu0 %v1942_v4  ;;  %v2370_v4 = vld [vmem:[%s5520_s9 + $0x58] sm:$0xff] }
 0x5a4   : > { %4226 = vmatprep.subr.mxu0 %v4525_v15 }
 0x5a5   : > { %4227 = vmatpush3.msra.mxu0 %v1941_v51  ;;  %v2369_v51 = vld [vmem:[%s5520_s9 + $0x50] sm:$0xff] }
 0x5a6   : > { %4228 = vmatprep.subr.mxu0 %v4525_v15 }
 0x5a7   : > { %4229 = vmatpush3.msra.mxu0 %v1940_v52  ;;  %v2368_v52 = vld [vmem:[%s5520_s9 + $0x48] sm:$0xff] }
 0x5a8   : > { %4230 = vmatprep.subr.mxu0 %v4525_v15 }
 0x5a9   : > { %4231 = vmatpush3.msra.mxu0 %v1939_v53  ;;  %v2367_v53 = vld [vmem:[%s5520_s9 + $0x40] sm:$0xff] }
 0x5aa   : > { %4232 = vmatprep.subr.mxu0 %v4525_v15 }
 0x5ab   : > { %4233 = vmatpush3.msra.mxu0 %v1938_v54 }
 0x5ac   : > { %4234 = vmatprep.subr.mxu0 %v4525_v15 }
 0x5ad   : > { %4235 = vmatpush3.msra.mxu0 %v1937_v55 }
 0x5ae   : > { %4236 = vmatprep.subr.mxu0 %v4525_v15 }
 0x5af   : > { %4237 = vmatpush3.msra.mxu0 %v1936_v56  ;;  %v3619_v56 = vadd.s32 4294967265, %v5213_v3 }
 0x5b0   : > { %4238 = vmatprep.subr.mxu0 %v4525_v15 }
 0x5b1   : > { %4239 = vmatpush3.msra.mxu0 %v1935_v57  ;;  %vm2724_vm8 = vcmp.eq.s32.totalorder %v4664_v9, %v3619_v56  ;;  %vm2725_vm9 = vcmp.eq.s32.totalorder %v4701_v29, %v3619_v56  ;;  %vm2726_vm11 = vcmp.eq.s32.totalorder %v4706_v32, %v3619_v56  ;;  %vm2727_vm14 = vcmp.eq.s32.totalorder %v4716_v37, %v3619_v56 }
 0x5b2   : > { %4240 = vmatprep.subr.mxu0 %v4525_v15  ;;  %v3620_v57 = vsel %vm2724_vm8, 1.0, %v4525_v15 }
 0x5b3   : > { %4241 = vmatpush3.msra.mxu0 %v1934_v58  ;;  %v2736_v58 = vadd.f32 %v3620_v57, %v5220_v6 }
 0x5b4   : > { %4242 = vmatprep.subr.mxu0 %v4525_v15 }
 0x5b5   : > { %4243 = vmatpush3.msra.mxu0 %v1933_v59 }
 0x5b6   : > { %4244 = vmatprep.subr.mxu0 %v4525_v15 }
 0x5b7   : > { %4245 = vmatpush3.msra.mxu0 %v1932_v60 }
 0x5b8   : > { %4282 = vmatprep.subr.mxu0 %v2382_v10 }
 0x637   : > { %v2186_v61 = vpop.f32.mrf.mxu1 }
 0x638   : > { %v2039_v62 = vpop.f32.mrf.mxu0 }
 0x639   : > { %v4213_v63 = vpop.f32.mrf.mxu1  ;;  %4247 = vmatmul.mubr.f32.vlgmr.msra.gmra.mxu0 %v2039_v62 }
 0x63a   : > { %v4143_v0 = vpop.f32.mrf.mxu0  ;;  %4283 = vmatpush3.msra.mxu0 %v2382_v10  ;;  %v3610_v63 = vld [vmem:[%s5521_s10] ss:$0 sm:$0xff] }
 0x63b   : > { %4284 = vmatprep.subr.mxu0 %v2381_v11 }
 0x63c   : > { %4285 = vmatpush3.msra.mxu0 %v2381_v11 }
 0x63d   : > { %4286 = vmatprep.subr.mxu0 %v2380_v12 }
 0x63e   : > { %4287 = vmatpush3.msra.mxu0 %v2380_v12 }
 0x63f   : > { %4288 = vmatprep.subr.mxu0 %v2379_v14 }
 0x640   : > { %4289 = vmatpush3.msra.mxu0 %v2379_v14 }
 0x641   : > { %4290 = vmatprep.subr.mxu0 %v2378_v18 }
 0x642   : > { %4291 = vmatpush3.msra.mxu0 %v2378_v18  ;;  %v3621_v18 = vsel %vm2725_vm9, 1.0, %v4525_v15 }
 0x643   : > { %4292 = vmatprep.subr.mxu0 %v2377_v19 }
 0x644   : > { %4293 = vmatpush3.msra.mxu0 %v2377_v19  ;;  %v5340_v19 = vsel %vm2717_vm10, 1.0, %v4525_v15 }
 0x645   : > { %4294 = vmatprep.subr.mxu0 %v2376_v34 }
 0x646   : > { %4295 = vmatpush3.msra.mxu0 %v2376_v34  ;;  %v2837_v34 = vld [vmem:[%s5522_s11] sm:$0xff] }
 0x647   : > { %4296 = vmatprep.subr.mxu0 %v2375_v35 }
 0x648   : > { %4297 = vmatpush3.msra.mxu0 %v2375_v35 }
 0x658   : > { %v2115_v1 = vpop.f32.mrf.mxu0 }
 0x659   : > { %v2116_v24 = vadd.f32 %v3599_v20, %v2115_v1 }
 0x65a   : > { %v4178_v2 = vpop.f32.mrf.mxu0 }
 0x65b   : > { %v2119_v31 = vmax.f32 %v2116_v24, 0.0  ;;  %v5349_v24 = vsel %vm2718_vm12, 1.0, %v4525_v15 }
 0x6f9   : > { %v2256_v21 = vpop.f32.mrf.mxu0 }
 0x6fa   : > { %v2257_v22 = vadd.f32 %v2256_v21, %v2186_v61 }
 0x6fb   : > { %v4248_v23 = vpop.f32.mrf.mxu0 }
 0x6fc   : > { %v2260_v25 = vadd.f32 %v3599_v20, %v2257_v22  ;;  %v3622_v20 = vsel %vm2726_vm11, 1.0, %v4525_v15  ;;  %v2737_v22 = vadd.f32 %v3621_v18, %v5250_v26 }
 0x6fd   : > { %v2738_v23 = vadd.f32 %v3622_v20, %v5340_v19 }
 0x6fe   : > { %v2261_v30 = vmax.f32 %v2260_v25, 0.0  ;;  %v3623_v25 = vsel %vm2727_vm14, 1.0, %v4525_v15 }
 0x700   : > { %4249 = vmatprep.subr.mxu1 %v2261_v30 }
 0x701   : > { %4250 = vmatpush3.msra.mxu1 %v2261_v30  ;;  %v2839_v30 = vld [vmem:[%s5522_s11 + $0x10] sm:$0xff] }
 0x702   : > { %4251 = vmatprep.subr.mxu1 %v2119_v31 }
 0x703   : > { %4252 = vmatpush3.msra.mxu1 %v2119_v31  ;;  %v2739_v31 = vadd.f32 %v3623_v25, %v5349_v24 }
 0x704   : > { %4254 = vmatmul.mubr.msk.f32.vlgmr.msra.gmra.mxu1 %vm1469_vm15, %v2277_v33  ;;  %v2838_v33 = vld [vmem:[%s5522_s11 + $0x8] sm:$0xff] }
 0x705   : > { %4260 = vmatprep.mubr.msk.f32.mxu1 %vm1469_vm15, %v5074_v28 }
 0x7c4   : > { %v4255_v38 = vpop.f32.mrf.mxu1 }
 0x7c5   : > { %4256 = vmatprep.subr.mxu1 %v4255_v38 }
 0x7c6   : > { %v2350_v39 = vpop.f32.mrf.mxu1  ;;  %4257 = vmatpush3.msra.mxu1 %v4255_v38 }
 0x7c7   : > { %4258 = vmatprep.subr.mxu1 %v2350_v39  ;;  %4298 = vmatprep.mubr.msk.f32.mxu0 %vm570_vm1, %v2350_v39 }
 0x7c8   : > { %4259 = vmatpush3.msra.mxu1 %v2350_v39  ;;  %4299 = vmatmul.mubr.msk.f32.vlgmr.msra.gmra.mxu0 %vm570_vm1, %v4255_v38 }
 0x7c9   : > { %4261 = vmatmul.mubr.msk.f32.vlgmr.msra.gmra.mxu1 %vm1469_vm15, %v5266_v16  ;;  %4263 = vmatprep.subr.mxu1 %v2366_v40 }
 0x7ca   : > { %4264 = vmatpush3.msra.mxu1 %v2366_v40  ;;  %4279 = vmatprep.mubr.msk.f32.mxu1 %vm570_vm1, %v2350_v39  ;;  %v2850_v39 = vadd.s32 1, %v4706_v32 }
 0x7cb   : > { %4265 = vmatprep.subr.mxu1 %v2365_v17  ;;  %4328 = vmatprep.mubr.msk.f32.mxu0 %vm949_vm13, %v2736_v58 }
 0x7cc   : > { %4266 = vmatpush3.msra.mxu1 %v2365_v17  ;;  %v2851_v17 = vadd.s32 1, %v4716_v37  ;;  %vm2852_vm15 = vcmp.eq.s32.totalorder %v4669_v13, %v2850_v39 }
 0x7cd   : > { %4267 = vmatprep.subr.mxu1 %v2364_v41 }
 0x7ce   : > { %4268 = vmatpush3.msra.mxu1 %v2364_v41  ;;  %v2848_v41 = vld [vmem:[%s5522_s11 + $0x58] sm:$0xff]  ;;  %vm2853_vm0 = vcmp.eq.s32.totalorder %v4669_v13, %v2851_v17  ;;  %v2845_v13 = vld [vmem:[%s5522_s11 + $0x40] sm:$0xff] }
 0x7cf   : > { %4269 = vmatprep.subr.mxu1 %v2363_v42 }
 0x7d0   : > { %4270 = vmatpush3.msra.mxu1 %v2363_v42  ;;  %v3628_v42 = vsel %vm2852_vm15, 1.0, %v4525_v15 }
 0x7d1   : > { %4271 = vmatprep.subr.mxu1 %v2362_v43 }
 0x7d2   : > { %4272 = vmatpush3.msra.mxu1 %v2362_v43  ;;  %v2847_v43 = vld [vmem:[%s5522_s11 + $0x50] sm:$0xff] }
 0x7d3   : > { %4273 = vmatprep.subr.mxu1 %v2361_v44 }
 0x7d4   : > { %4274 = vmatpush3.msra.mxu1 %v2361_v44  ;;  %v3629_v44 = vsel %vm2853_vm0, 1.0, %v4525_v15 }
 0x7d5   : > { %4275 = vmatprep.subr.mxu1 %v2360_v45 }
 0x7d6   : > { %4276 = vmatpush3.msra.mxu1 %v2360_v45  ;;  %v2846_v45 = vld [vmem:[%s5522_s11 + $0x48] sm:$0xff] }
 0x7d7   : > { %4277 = vmatprep.subr.mxu1 %v2359_v46 }
 0x7d8   : > { %4278 = vmatpush3.msra.mxu1 %v2359_v46  ;;  %v2843_v46 = vld [vmem:[%s5522_s11 + $0x30] sm:$0xff] }
 0x7d9   : > { %4280 = vmatmul.mubr.msk.f32.vlgmr.msra.gmra.mxu1 %vm570_vm1, %v4255_v38  ;;  %4301 = vmatprep.subr.mxu1 %v2374_v47 }
 0x7da   : > { %4302 = vmatpush3.msra.mxu1 %v2374_v47  ;;  %v2842_v47 = vld [vmem:[%s5522_s11 + $0x28] sm:$0xff] }
 0x7db   : > { %4303 = vmatprep.subr.mxu1 %v2373_v48 }
 0x7dc   : > { %4304 = vmatpush3.msra.mxu1 %v2373_v48  ;;  %v2841_v48 = vld [vmem:[%s5522_s11 + $0x20] sm:$0xff] }
 0x7dd   : > { %4305 = vmatprep.subr.mxu1 %v2372_v49 }
 0x7de   : > { %4306 = vmatpush3.msra.mxu1 %v2372_v49 }
 0x7df   : > { %4307 = vmatprep.subr.mxu1 %v2371_v50 }
 0x7e0   : > { %4308 = vmatpush3.msra.mxu1 %v2371_v50 }
 0x7e1   : > { %4309 = vmatprep.subr.mxu1 %v2370_v4 }
 0x7e2   : > { %4310 = vmatpush3.msra.mxu1 %v2370_v4 }
 0x7e3   : > { %4311 = vmatprep.subr.mxu1 %v2369_v51 }
 0x7e4   : > { %4312 = vmatpush3.msra.mxu1 %v2369_v51 }
 0x7e5   : > { %4313 = vmatprep.subr.mxu1 %v2368_v52 }
 0x7e6   : > { %4314 = vmatpush3.msra.mxu1 %v2368_v52  ;;  %v5415_v52 = vadd.s32 4294967233, %v5213_v3 }
 0x7e7   : > { %4315 = vmatprep.subr.mxu1 %v2367_v53 }
 0x7e8   : > { %4316 = vmatpush3.msra.mxu1 %v2367_v53  ;;  %vm3267_vm2 = vcmp.eq.s32.totalorder %v4664_v9, %v5415_v52  ;;  %vm3269_vm3 = vcmp.eq.s32.totalorder %v4706_v32, %v5415_v52  ;;  %vm3270_vm4 = vcmp.eq.s32.totalorder %v4716_v37, %v5415_v52  ;;  %v3252_v32 = vadd.s32 48, %v4664_v9 }
 0x7e9   : > { %v3652_v53 = vsel %vm3267_vm2, 1.0, %v4525_v15 }
 0x7ea   : > { %vm3256_vm9 = vcmp.eq.s32.totalorder %v3252_v32, %v5213_v3  ;;  %vm3273_vm10 = vcmp.eq.s32.totalorder %v3252_v32, %v5415_v52 }
 0x888   : > { %v4300_v60 = vpop.f32.mrf.mxu0 }
 0x889   : > { %v4262_v54 = vpop.f32.mrf.mxu1 }
 0x88b   : > { %v2459_v55 = vpop.f32.mrf.mxu1 }
 0x88c   : > { %4317 = vmatprep.mubr.msk.f32.mxu1 %vm570_vm1, %v2459_v55 }
 0x88d   : > { %4318 = vmatmul.mubr.msk.f32.vlgmr.msra.gmra.mxu1 %vm570_vm1, %v4262_v54  ;;  %v3291_v54 = vadd.f32 %v3652_v53, %v5220_v6 }
 0x88e   : > { %4342 = vmatprep.mubr.msk.f32.mxu1 %vm949_vm13, %v5074_v28  ;;  %v2623_v28 = vpop.f32.mrf.mxu0 }
 0x899   : > { %v4281_v59 = vpop.f32.mrf.mxu1 }
 0x89a   : > { %v2552_v7 = vadd.f32 %v4281_v59, %v3610_v63 }
 0x89b   : > { %v2546_v61 = vpop.f32.mrf.mxu1 }
 0x89c   : > { %v2547_v11 = vadd.f32 %v3610_v63, %v2546_v61  ;;  %v2556_v14 = vmax.f32 %v2552_v7, 0.0 }
 0x89e   : > { %v2555_v21 = vmax.f32 %v2547_v11, 0.0 }
 0x94d   : > { %v4319_v62 = vpop.f32.mrf.mxu1 }
 0x94e   : > { %v2710_v0 = vadd.f32 %v4319_v62, %v4300_v60 }
 0x94f   : > { %v2704_v1 = vpop.f32.mrf.mxu1 }
 0x950   : > { %v2714_v2 = vadd.f32 %v3610_v63, %v2710_v0  ;;  %v2705_v5 = vadd.f32 %v2704_v1, %v2623_v28 }
 0x952   : > { %v2716_v8 = vmax.f32 %v2714_v2, 0.0  ;;  %v2713_v10 = vadd.f32 %v3610_v63, %v2705_v5  ;;  %v3634_v2 = vld [vmem:[#allocation2] ss:$0 sm:$0xff] }
 0x954   : > { %v2715_v12 = vmax.f32 %v2713_v10, 0.0  ;;  %4320 = vmatprep.subr.mxu0 %v2716_v8 }
 0x955   : > { %4321 = vmatpush3.msra.mxu0 %v2716_v8 }
 0x956   : > { %4322 = vmatprep.subr.mxu0 %v2715_v12 }
 0x957   : > { %4323 = vmatpush3.msra.mxu0 %v2715_v12 }
 0x958   : > { %4324 = vmatprep.subr.mxu0 %v2556_v14 }
 0x959   : > { %4325 = vmatpush3.msra.mxu0 %v2556_v14 }
 0x95a   : > { %4326 = vmatprep.subr.mxu0 %v2555_v21 }
 0x95b   : > { %4327 = vmatpush3.msra.mxu0 %v2555_v21 }
 0x95c   : > { %4329 = vmatmul.mubr.msk.f32.vlgmr.msra.gmra.mxu0 %vm949_vm13, %v2737_v22  ;;  %4348 = vmatprep.subr.mxu0 %v2840_v27 }
 0x95d   : > { %4331 = vmatprep.mubr.msk.f32.mxu0 %vm949_vm13, %v2738_v23  ;;  %4349 = vmatpush3.msra.mxu0 %v2840_v27 }
 0x95e   : > { %4350 = vmatprep.subr.mxu0 %v2839_v30 }
 0x95f   : > { %4351 = vmatpush3.msra.mxu0 %v2839_v30 }
 0x960   : > { %4332 = vmatmul.mubr.msk.f32.gmra.mxu0 %vm949_vm13, %v2739_v31  ;;  %4352 = vmatprep.subr.mxu0 %v2838_v33  ;;  %v3250_v31 = vadd.s32 32, %v4664_v9 }
 0x961   : > { %4353 = vmatpush3.msra.mxu0 %v2838_v33 }
 0x962   : > { %4354 = vmatprep.subr.mxu0 %v2837_v34  ;;  %vm3254_vm5 = vcmp.eq.s32.totalorder %v3250_v31, %v5213_v3  ;;  %vm3271_vm6 = vcmp.eq.s32.totalorder %v3250_v31, %v5415_v52 }
 0x963   : > { %4355 = vmatpush3.msra.mxu0 %v2837_v34  ;;  %v3647_v37 = vsel %vm3254_vm5, 1.0, %v4525_v15 }
 0xa1c   : > { %v4330_v35 = vpop.f32.mrf.mxu0 }
 0xa1e   : > { %v2818_v36 = vpop.f32.mrf.mxu0 }
 0xa1f   : > { %4356 = vmatprep.mubr.msk.f32.mxu0 %vm949_vm13, %v2818_v36 }
 0xa20   : > { %v4333_v38 = vpop.f32.mrf.mxu0  ;;  %4357 = vmatmul.mubr.msk.f32.vlgmr.msra.gmra.mxu0 %vm949_vm13, %v4330_v35 }
 0xa21   : > { %4334 = vmatprep.subr.mxu1 %v4333_v38 }
 0xa22   : > { %v2828_v40 = vpop.f32.mrf.mxu0  ;;  %4335 = vmatpush3.msra.mxu1 %v4333_v38 }
 0xa23   : > { %4336 = vmatprep.subr.mxu1 %v2828_v40  ;;  %4359 = vmatprep.mubr.msk.f32.mxu0 %vm949_vm13, %v2828_v40 }
 0xa24   : > { %4337 = vmatpush3.msra.mxu1 %v2828_v40  ;;  %4360 = vmatmul.mubr.msk.f32.gmra.mxu0 %vm949_vm13, %v4333_v38 }
 0xa25   : > { %4338 = vmatprep.subr.mxu1 %v4330_v35 }
 0xa26   : > { %4339 = vmatpush3.msra.mxu1 %v4330_v35 }
 0xa27   : > { %4340 = vmatprep.subr.mxu1 %v2818_v36 }
 0xa28   : > { %4341 = vmatpush3.msra.mxu1 %v2818_v36 }
 0xa29   : > { %4343 = vmatmul.mubr.msk.f32.vlgmr.msra.gmra.mxu1 %vm949_vm13, %v5266_v16  ;;  %4362 = vmatprep.subr.mxu1 %v2848_v41  ;;  %v2844_v16 = vld [vmem:[%s5522_s11 + $0x38] sm:$0xff] }
 0xa2a   : > { %4363 = vmatpush3.msra.mxu1 %v2848_v41  ;;  %4345 = vmatprep.mubr.msk.f32.mxu1 %vm949_vm13, %v3628_v42  ;;  %v3655_v41 = vsel %vm3270_vm4, 1.0, %v4525_v15  ;;  %v3656_v42 = vsel %vm3271_vm6, 1.0, %v4525_v15 }
 0xa2b   : > { %4364 = vmatprep.subr.mxu1 %v2847_v43  ;;  %4376 = vmatprep.subr.mxu0 %v2844_v16 }
 0xa2c   : > { %4365 = vmatpush3.msra.mxu1 %v2847_v43  ;;  %4377 = vmatpush3.msra.mxu0 %v2844_v16  ;;  %v3253_v43 = vadd.s32 56, %v4664_v9 }
 0xa2d   : > { %4346 = vmatmul.mubr.msk.f32.gmra.mxu1 %vm949_vm13, %v3629_v44  ;;  %4366 = vmatprep.subr.mxu1 %v2846_v45 }
 0xa2e   : > { %4367 = vmatpush3.msra.mxu1 %v2846_v45  ;;  %4370 = vmatprep.mubr.msk.f32.mxu1 %vm949_vm13, %v2818_v36  ;;  %vm3257_vm11 = vcmp.eq.s32.totalorder %v3253_v43, %v5213_v3  ;;  %vm3274_vm12 = vcmp.eq.s32.totalorder %v3253_v43, %v5415_v52 }
 0xa2f   : > { %4368 = vmatprep.subr.mxu1 %v2845_v13  ;;  %4378 = vmatprep.subr.mxu0 %v2843_v46 }
 0xa30   : > { %4369 = vmatpush3.msra.mxu1 %v2845_v13  ;;  %4379 = vmatpush3.msra.mxu0 %v2843_v46  ;;  %v3658_v13 = vsel %vm3273_vm10, 1.0, %v4525_v15  ;;  %v3650_v46 = vsel %vm3257_vm11, 1.0, %v4525_v15 }
 0xa31   : > { %4371 = vmatmul.mubr.msk.f32.vlgmr.msra.gmra.mxu1 %vm949_vm13, %v4330_v35  ;;  %4380 = vmatprep.subr.mxu0 %v2842_v47 }
 0xa32   : > { %4373 = vmatprep.mubr.msk.f32.mxu1 %vm949_vm13, %v2828_v40  ;;  %4381 = vmatpush3.msra.mxu0 %v2842_v47  ;;  %v3659_v47 = vsel %vm3274_vm12, 1.0, %v4525_v15 }
 0xa33   : > { %4382 = vmatprep.subr.mxu0 %v2841_v48 }
 0xa34   : > { %4383 = vmatpush3.msra.mxu0 %v2841_v48  ;;  %v3298_v48 = vadd.f32 %v3659_v47, %v3650_v46 }
 0xa35   : > { %4374 = vmatmul.mubr.msk.f32.gmra.mxu1 %vm949_vm13, %v4333_v38  ;;  %v3654_v38 = vsel %vm3269_vm3, 1.0, %v4525_v15 }
 0xa36   : > { %4406 = vmatprep.mubr.msk.f32.mxu1 %vm570_vm1, %v3291_v54  ;;  %v3293_v17 = vadd.f32 %v3654_v38, %v5340_v19  ;;  %v3295_v19 = vadd.f32 %v3656_v42, %v3647_v37 }
 0xae0   : > { %v4358_v55 = vpop.f32.mrf.mxu0 }
 0xae1   : > { %v3043_v27 = vadd.f32 %v4358_v55, %v3634_v2 }
 0xae2   : > { %v3037_v56 = vpop.f32.mrf.mxu0 }
 0xae3   : > { %v3038_v33 = vadd.f32 %v3634_v2, %v3037_v56  ;;  %v3057_v36 = vmax.f32 %v3043_v27, 0.0 }
 0xae4   : > { %v4361_v57 = vpop.f32.mrf.mxu0 }
 0xae5   : > { %v3053_v21 = vadd.f32 %v4361_v57, %v3634_v2  ;;  %v3056_v40 = vmax.f32 %v3038_v33, 0.0 }
 0xae6   : > { %v3047_v59 = vpop.f32.mrf.mxu0 }
 0xae7   : > { %v3048_v23 = vadd.f32 %v3634_v2, %v3047_v59  ;;  %v3059_v30 = vmax.f32 %v3053_v21, 0.0 }
 0xae9   : > { %v4344_v49 = vpop.f32.mrf.mxu1  ;;  %v3058_v34 = vmax.f32 %v3048_v23, 0.0 }
 0xaeb   : > { %v2934_v50 = vpop.f32.mrf.mxu1 }
 0xaec   : > { %4384 = vmatprep.mubr.msk.f32.mxu0 %vm949_vm13, %v2934_v50 }
 0xaed   : > { %v4347_v4 = vpop.f32.mrf.mxu1  ;;  %4385 = vmatmul.mubr.msk.f32.vlgmr.msra.gmra.mxu0 %vm949_vm13, %v4344_v49 }
 0xaef   : > { %v2944_v51 = vpop.f32.mrf.mxu1 }
 0xaf0   : > { %4387 = vmatprep.mubr.msk.f32.mxu0 %vm949_vm13, %v2944_v51 }
 0xaf1   : > { %4388 = vmatmul.mubr.msk.f32.gmra.mxu0 %vm949_vm13, %v4347_v4  ;;  %v4372_v58 = vpop.f32.mrf.mxu1  ;;  %vm3268_vm13 = vcmp.eq.s32.totalorder %v4701_v29, %v5415_v52  ;;  %v3251_v29 = vadd.s32 40, %v4664_v9  ;;  %v3649_v9 = vsel %vm3256_vm9, 1.0, %v4525_v15 }
 0xaf2   : > { %v3653_v35 = vsel %vm3268_vm13, 1.0, %v4525_v15  ;;  %v3297_v16 = vadd.f32 %v3658_v13, %v3649_v9 }
 0xaf3   : > { %v3126_v60 = vpop.f32.mrf.mxu1  ;;  %v3292_v39 = vadd.f32 %v3653_v35, %v5250_v26  ;;  %vm3255_vm7 = vcmp.eq.s32.totalorder %v3251_v29, %v5213_v3  ;;  %vm3272_vm8 = vcmp.eq.s32.totalorder %v3251_v29, %v5415_v52  ;;  %v3294_v26 = vadd.f32 %v3655_v41, %v5349_v24 }
 0xaf4   : > { %v3648_v44 = vsel %vm3255_vm7, 1.0, %v4525_v15  ;;  %v3657_v45 = vsel %vm3272_vm8, 1.0, %v4525_v15 }
 0xaf5   : > { %v4375_v62 = vpop.f32.mrf.mxu1  ;;  %v3296_v24 = vadd.f32 %v3657_v45, %v3648_v44 }
 0xaf7   : > { %v3136_v5 = vpop.f32.mrf.mxu1 }
 0xbad   : > { %v4386_v61 = vpop.f32.mrf.mxu0 }
 0xbae   : > { %v3229_v28 = vadd.f32 %v4386_v61, %v4372_v58 }
 0xbaf   : > { %v3223_v63 = vpop.f32.mrf.mxu0 }
 0xbb0   : > { %v3224_v8 = vadd.f32 %v3223_v63, %v3126_v60  ;;  %v3243_v11 = vadd.f32 %v3634_v2, %v3229_v28 }
 0xbb1   : > { %v4389_v0 = vpop.f32.mrf.mxu0 }
 0xbb2   : > { %v3239_v1 = vadd.f32 %v4389_v0, %v4375_v62  ;;  %v3242_v18 = vadd.f32 %v3634_v2, %v3224_v8  ;;  %v3247_v22 = vmax.f32 %v3243_v11, 0.0 }
 0xbb3   : > { %v3233_v7 = vpop.f32.mrf.mxu0 }
 0xbb4   : > { %v3245_v10 = vadd.f32 %v3634_v2, %v3239_v1  ;;  %v3234_v6 = vadd.f32 %v3233_v7, %v3136_v5  ;;  %v3246_v25 = vmax.f32 %v3242_v18, 0.0 }
 0xbb6   : > { %v3249_v12 = vmax.f32 %v3245_v10, 0.0  ;;  %v3244_v14 = vadd.f32 %v3634_v2, %v3234_v6 }
 0xbb8   : > { %v3248_v20 = vmax.f32 %v3244_v14, 0.0  ;;  %4390 = vmatprep.subr.mxu1 %v3249_v12 }
 0xbb9   : > { %4391 = vmatpush3.msra.mxu1 %v3249_v12 }
 0xbba   : > { %4392 = vmatprep.subr.mxu1 %v3248_v20 }
 0xbbb   : > { %4393 = vmatpush3.msra.mxu1 %v3248_v20 }
 0xbbc   : > { %4394 = vmatprep.subr.mxu1 %v3247_v22 }
 0xbbd   : > { %4395 = vmatpush3.msra.mxu1 %v3247_v22 }
 0xbbe   : > { %4396 = vmatprep.subr.mxu1 %v3246_v25 }
 0xbbf   : > { %4397 = vmatpush3.msra.mxu1 %v3246_v25 }
 0xbc0   : > { %4398 = vmatprep.subr.mxu1 %v3059_v30 }
 0xbc1   : > { %4399 = vmatpush3.msra.mxu1 %v3059_v30 }
 0xbc2   : > { %4400 = vmatprep.subr.mxu1 %v3058_v34 }
 0xbc3   : > { %4401 = vmatpush3.msra.mxu1 %v3058_v34 }
 0xbc4   : > { %4402 = vmatprep.subr.mxu1 %v3057_v36 }
 0xbc5   : > { %4403 = vmatpush3.msra.mxu1 %v3057_v36 }
 0xbc6   : > { %4404 = vmatprep.subr.mxu1 %v3056_v40 }
 0xbc7   : > { %4405 = vmatpush3.msra.mxu1 %v3056_v40 }
 0xbc8   : > { %4407 = vmatmul.mubr.msk.f32.vlgmr.msra.gmra.mxu1 %vm570_vm1, %v3292_v39 }
 0xbc9   : > { %4409 = vmatprep.mubr.msk.f32.mxu1 %vm570_vm1, %v3293_v17 }
 0xbcc   : > { %4410 = vmatmul.mubr.msk.f32.gmra.mxu1 %vm570_vm1, %v3294_v26 }
 0xbcd   : > { %4412 = vmatprep.mubr.msk.f32.mxu1 %vm570_vm1, %v3295_v19 }
 0xbd0   : > { %4413 = vmatmul.mubr.msk.f32.gmra.mxu1 %vm570_vm1, %v3296_v24 }
 0xbd1   : > { %4415 = vmatprep.mubr.msk.f32.mxu1 %vm570_vm1, %v3297_v16 }
 0xbd4   : > { %4416 = vmatmul.mubr.msk.f32.gmra.mxu1 %vm570_vm1, %v3298_v48 }
 0xbd5   : > { %4475 = shalt.err (!%p4472_p3)
}
 0xbd6   : > { %s4476_s12 = scalar_lea.hbm %s3454_s27, 128  ;;  %s4480_s28 = scalar_lea.hbm %s5524_s13, 256 }
 0xbd7   : > { %p4477_p4 = scmp.ne.s32.totalorder %s3454_s27, %s4476_s12  ;;  %p4481_p9 = scmp.lt.s32.totalorder %s3454_s27, %s5524_s13 }
 0xbd8   : > { %p4482_p10 = scmp.lt.s32.totalorder %s4480_s28, %s4476_s12 }
 0xbd9   : > { %p4478_p7 = pnand %p4477_p4, %p4644_p5 }
 0xbda   : > { %p4483_p11 = por %p4482_p10, %p4481_p9 }
 0xbdb   : > { %p4479_p8 = pneg %p4478_p7 }
 0xbdd   : > { %p4484_p12 = pnand %p4483_p11, %p4479_p8 }
 0xbdf   : > { %4487 = shalt.err (!%p4484_p12)
}
 0xbe0   : > { %4418 = dma.vmem_to_hbm [thread:$0]  (%p4644_p5), %s3457_s1, 128, %s3454_s27, %s3438_s22   ;;  %vm3428_vm1 = vcmask 7168  }
 0xbe1   : > { %s5545_s2 = sshll.u32 %s4656_s26, 6 }
 0xbe2   : > { %s480_s5 = scalar_lea.vmem %s5525_s14, %s5545_s2 }
 0xc88   : > { %v4408_v15 = vpop.f32.mrf.mxu1 }
 0xc89   : > { %3430 = vst.msk [vmem:[%s480_s5 + $0x8] sm:$0xff] %vm3428_vm1, %v4408_v15 }
 0xc8a   : > { %v3389_v3 = vpop.f32.mrf.mxu1 }
 0xc8b   : > { %3429 = vst.msk [vmem:[%s480_s5] sm:$0xff] %vm3428_vm1, %v3389_v3 }
 0xc8c   : > { %v4411_v49 = vpop.f32.mrf.mxu1 }
 0xc8d   : > { %3432 = vst.msk [vmem:[%s480_s5 + $0x18] sm:$0xff] %vm3428_vm1, %v4411_v49 }
 0xc8e   : > { %v3399_v50 = vpop.f32.mrf.mxu1 }
 0xc8f   : > { %3431 = vst.msk [vmem:[%s480_s5 + $0x10] sm:$0xff] %vm3428_vm1, %v3399_v50 }
 0xc90   : > { %v4414_v4 = vpop.f32.mrf.mxu1 }
 0xc91   : > { %3434 = vst.msk [vmem:[%s480_s5 + $0x28] sm:$0xff] %vm3428_vm1, %v4414_v4 }
 0xc92   : > { %v3409_v51 = vpop.f32.mrf.mxu1 }
 0xc93   : > { %3433 = vst.msk [vmem:[%s480_s5 + $0x20] sm:$0xff] %vm3428_vm1, %v3409_v51 }
 0xc94   : > { %v4417_v52 = vpop.f32.mrf.mxu1 }
 0xc95   : > { %3436 = vst.msk [vmem:[%s480_s5 + $0x38] sm:$0xff] %vm3428_vm1, %v4417_v52 }
 0xc96   : > { %v3419_v53 = vpop.f32.mrf.mxu1 }
 0xc97   : > { %3435 = vst.msk [vmem:[%s480_s5 + $0x30] sm:$0xff] %vm3428_vm1, %v3419_v53 }
 0xc98 PF: > { %p4424_p5 = scmp.ge.s32.totalorder %s4522_s18, 2  ;;  %s3471_s24 = sand.u32 1, %s4510_s15  }
 0xc99   : > { %s3472_s26 = scalar_lea.sflag [#allocation4], %s3471_s24 }
 0xc9a   : > { %p4421_p13 = pnand %p4424_p5, %p4648_p6 }
 0xc9c   : > { %p4422_p0 = pneg %p4421_p13 }
 0xc9e   : > { %4505 = dma.done.wait (%p4422_p0), %s3472_s26, 128  }
 0xc9f   : > { %4507 = vsyncadd (%p4422_p0), %s3472_s26, 4294967168  ;;  %p27_p1 = scmp.ge.s32.totalorder %s4631_s20, 4   ;;  %s5546_s15 = smov %s4514_s16 }
 0xca0   : > { %s5547_s16 = smov %s4518_s17  ;;  %s5548_s17 = smov %s4642_s23 }
 0xca1   : > { %s5549_s18 = smov %s4631_s20  ;;  %29 = sbr.rel (!%p27_p1) target bundleno = 10 (0xa), region = 119 }
 0xca6   :  { %3485 = vsyncpa [#allocation4], 1 }
 0xca7   :  { %3487 = vsyncpa [#allocation4 + $0x1], 1 }

</bundles_post_ra>
